<compile_context>
chip_gen: v6e
topology: v6e:2x2x1
jax: 0.10.0
libtpu: 0.0.40
codegen_flags: <defaults>
</compile_context>

<pallas_src>
import math
from functools import partial

import jax
import jax.numpy as jnp
from jax.experimental import pallas as pl
from jax.experimental.pallas import tpu as pltpu

F32 = jnp.float32
BF16 = jnp.bfloat16
BN_EPS = 1e-5

TM_MAX = 1024            # max rows (M) per MXU tile
TN_SINGLE_MAX = 640      # single full-width cout tile up to this many (padded) cols
TK_MAX = 2048            # K tile width when the reduction must be split
K_SINGLE_MAX = 2048      # run the whole K reduction in one step below this
VMEM_BUDGET = 16 * 1024 * 1024   # per-kernel tile budget (double-buffering included)
VMEM_LIMIT = 32 * 1024 * 1024    # scoped VMEM limit (== default on v6e/v7x, > v5e's 16MiB)


def _rup(x, m):
    return ((x + m - 1) // m) * m


def _ceil_div(a, b):
    return -(-a // b)


# ---------------------------------------------------------------------------
# Pallas kernels
# ---------------------------------------------------------------------------
def _conv_matmul_kernel(x_ref, w_ref, o_ref, s_ref, q_ref, acc_ref):
    """Tiled matmul, bf16 operands, f32 accumulation.  Emits the per-channel sum /
    sum-of-squares of the (bias-free) conv output as per-M-tile partials so that
    train-mode BatchNorm statistics need no extra pass and the M grid axis can be
    megacore-parallel."""
    k = pl.program_id(2)      # K-tile index (reduction, innermost, "arbitrary")
    nk = pl.num_programs(2)

    @pl.when(k == 0)
    def _():
        acc_ref[...] = jnp.zeros_like(acc_ref)

    acc_ref[...] += jnp.dot(x_ref[...], w_ref[...],
                            preferred_element_type=jnp.float32)

    @pl.when(k == nk - 1)
    def _():
        yc = acc_ref[...]                       # conv output without bias (f32)
        o_ref[...] = yc.astype(o_ref.dtype)     # bf16 store for BN+ReLU layers
        s_ref[...] = jnp.sum(yc, axis=0, keepdims=True)
        q_ref[...] = jnp.sum(yc * yc, axis=0, keepdims=True)


def _make_pool_kernel(mode, k, ho, wo, inv_area):
    """Pooling with the whole padded image resident in VMEM; the window reduction
    uses shifted in-VMEM slices (no k*k patch expansion in HBM).  Avg accumulates
    in f32 and stores in the activation dtype."""
    def kern(x_ref, o_ref):
        first = x_ref[pl.ds(0, ho), pl.ds(0, wo), :]
        acc = first if mode == "max" else first.astype(F32)
        for dh in range(k):
            for dw in range(k):
                if dh == 0 and dw == 0:
                    continue
                v = x_ref[pl.ds(dh, ho), pl.ds(dw, wo), :]
                if mode == "max":
                    acc = jnp.maximum(acc, v)
                else:
                    acc = acc + v.astype(F32)
        if mode == "max":
            o_ref[...] = acc
        else:
            o_ref[...] = (acc * inv_area).astype(o_ref.dtype)
    return kern


# ---------------------------------------------------------------------------
# im2col helper (glue, plain JAX -- XLA fuses pad + slice + bf16 cast)
# ---------------------------------------------------------------------------
def _extract_patches(x, kh, kw, sh, sw, ph, pw):
    n, h, w, c = x.shape
    xp = jnp.pad(x, ((0, 0), (ph, ph), (pw, pw), (0, 0)))
    ho = (h + 2 * ph - kh) // sh + 1
    wo = (w + 2 * pw - kw) // sw + 1
    cols = []
    for dh in range(kh):
        for dw in range(kw):
            cols.append(xp[:, dh:dh + ho * sh:sh, dw:dw + wo * sw:sw, :])
    p = jnp.stack(cols, axis=3)   # (n, ho, wo, kh*kw, c)
    return p, ho, wo


# ---------------------------------------------------------------------------
# Conv2d (+ optional train-mode BatchNorm + ReLU)
# ---------------------------------------------------------------------------
def _choose_tiles(m, kdim, cout):
    # cout (N): 128-lane granularity.  Single full-width tile when small, otherwise
    # pick the tile width minimizing padding (fixes 384 -> 512 style waste).
    cpad = _rup(cout, 128)
    if cpad <= TN_SINGLE_MAX:
        tn, np_ = cpad, cpad
    else:
        tn, np_ = None, None
        for cand in (512, 384, 256, 128):
            padded = _rup(cpad, cand)
            if np_ is None or padded < np_:
                tn, np_ = cand, padded
    # K: single full-extent step (no padding, no acc revisits) when it fits.
    if kdim <= K_SINGLE_MAX:
        tk, kp = kdim, kdim
    else:
        kpad = _rup(kdim, 128)
        ntk = _ceil_div(kpad, TK_MAX)
        tk = _rup(_ceil_div(kpad, ntk), 128)
        kp = _rup(kpad, tk)
    # M: as large as the VMEM budget allows (fewer grid steps, better pipelining).
    def vmem_est(tm):
        return (2 * tm * tk * 2        # A, bf16, double buffered
                + 2 * tk * tn * 2      # W, bf16, double buffered
                + tm * tn * 4          # f32 accumulator scratch
                + 2 * tm * tn * 4      # output (worst case f32), double buffered
                + 4 * 2 * tn * 4)      # s / q partials
    tm_cap = TM_MAX
    while tm_cap > 128 and vmem_est(tm_cap) > VMEM_BUDGET:
        tm_cap //= 2
    ntm = _ceil_div(m, tm_cap)
    tm = _rup(_ceil_div(m, ntm), 16)   # 16: bf16 sublane packing
    mp = _rup(m, tm)
    return tm, mp, tn, np_, tk, kp


@partial(jax.jit, static_argnames=("sh", "sw", "ph", "pw", "bn_relu"))
def _conv2d(x, w, b, gamma, beta, *, sh, sw, ph, pw, bn_relu):
    n = x.shape[0]
    cout, cin, kh, kw = w.shape

    # im2col patches in bf16: halves the expanded tensor's HBM bytes and feeds the
    # MXU at its 2x bf16 rate.  Accumulation / statistics remain f32 in the kernel.
    patches, ho, wo = _extract_patches(x.astype(BF16), kh, kw, sh, sw, ph, pw)
    m = n * ho * wo
    kdim = kh * kw * cin
    a = patches.reshape(m, kdim)
    wm = jnp.transpose(w, (2, 3, 1, 0)).reshape(kdim, cout).astype(BF16)

    tm, mp, tn, np_, tk, kp = _choose_tiles(m, kdim, cout)
    a = jnp.pad(a, ((0, mp - m), (0, kp - kdim)))
    wm = jnp.pad(wm, ((0, kp - kdim), (0, np_ - cout)))
    n_m_tiles = mp // tm

    out_dtype = BF16 if bn_relu else F32
    grid = (np_ // tn, mp // tm, kp // tk)
    cost = pl.CostEstimate(
        flops=2 * mp * np_ * kp,
        transcendentals=0,
        bytes_accessed=(mp * kp * 2 + kp * np_ * 2
                        + mp * np_ * (2 if bn_relu else 4)
                        + 2 * n_m_tiles * np_ * 4),
    )

    y, s, q = pl.pallas_call(
        _conv_matmul_kernel,
        out_shape=(jax.ShapeDtypeStruct((mp, np_), out_dtype),
                   jax.ShapeDtypeStruct((n_m_tiles, 1, np_), F32),
                   jax.ShapeDtypeStruct((n_m_tiles, 1, np_), F32)),
        grid_spec=pltpu.PrefetchScalarGridSpec(
            num_scalar_prefetch=0,
            grid=grid,
            in_specs=[
                pl.BlockSpec((tm, tk), lambda j, i, k: (i, k)),
                pl.BlockSpec((tk, tn), lambda j, i, k: (k, j)),
            ],
            out_specs=[
                pl.BlockSpec((tm, tn), lambda j, i, k: (i, j)),
                pl.BlockSpec((None, 1, tn), lambda j, i, k: (i, 0, j)),
                pl.BlockSpec((None, 1, tn), lambda j, i, k: (i, 0, j)),
            ],
            scratch_shapes=[pltpu.VMEM((tm, tn), jnp.float32)],
        ),
        compiler_params=pltpu.CompilerParams(
            # BN statistics are per-M-tile partials, so both cout and M tiles are
            # independent -> megacore-parallel on v7x.  K stays innermost/arbitrary.
            dimension_semantics=("parallel", "parallel", "arbitrary"),
            vmem_limit_bytes=VMEM_LIMIT),
        cost_estimate=cost,
    )(a, wm)

    y = y[:m, :cout]
    if bn_relu:
        # Train-mode BatchNorm from the in-kernel per-tile sums.  The conv bias is a
        # per-channel constant and cancels exactly in (x - mean), so it is never added.
        # Applied as a JAX epilogue so XLA fuses the affine+ReLU with the unpad/reshape.
        s0 = jnp.sum(s[:, 0, :cout], axis=0)
        q0 = jnp.sum(q[:, 0, :cout], axis=0)
        mean_c = s0 / m
        # TODO(synk): E[x^2]-E[x]^2 can catastrophically cancel for large-mean channels;
        # a shifted / Welford accumulation would be safer (clamped at 0 here as a guard).
        var = jnp.maximum(q0 / m - mean_c * mean_c, 0.0)
        scale = gamma * jax.lax.rsqrt(var + BN_EPS)
        shift = beta - mean_c * scale
        y = jnp.maximum(y.astype(F32) * scale + shift, 0.0).astype(BF16)
    else:
        y = y + b
    return y.reshape(n, ho, wo, cout)


# ---------------------------------------------------------------------------
# Pooling (max / avg).  Strided pools: stride-1 kernel + JAX subsample (no patch
# materialization, no per-pool VMEM-budget heuristics).
# ---------------------------------------------------------------------------
@partial(jax.jit, static_argnames=("ksize", "stride", "padding", "mode"))
def _pool2d(x, *, ksize, stride, padding, mode):
    n, h, w, c = x.shape
    pad_value = 0.0 if mode == "avg" else float("-inf")  # AvgPool: count_include_pad=True
    xp = jnp.pad(x, ((0, 0), (padding, padding), (padding, padding), (0, 0)),
                 constant_values=pad_value)
    hp, wp = h + 2 * padding, w + 2 * padding
    ho1, wo1 = hp - ksize + 1, wp - ksize + 1
    y = pl.pallas_call(
        _make_pool_kernel(mode, ksize, ho1, wo1, 1.0 / (ksize * ksize)),
        out_shape=jax.ShapeDtypeStruct((n, ho1, wo1, c), x.dtype),
        grid=(n,),
        in_specs=[pl.BlockSpec((None, hp, wp, c), lambda b: (b, 0, 0, 0))],
        out_specs=pl.BlockSpec((None, ho1, wo1, c), lambda b: (b, 0, 0, 0)),
        compiler_params=pltpu.CompilerParams(
            dimension_semantics=("parallel",),
            vmem_limit_bytes=VMEM_LIMIT),
    )(xp)
    if stride > 1:
        y = y[:, ::stride, ::stride, :]
    return y


# ---------------------------------------------------------------------------
# Parameter construction (deterministic, synthetic)
# ---------------------------------------------------------------------------
class _ParamGen:
    def __init__(self, seed=0):
        self._key = jax.random.PRNGKey(seed)
        self._n = 0

    def next(self):
        self._n += 1
        return jax.random.fold_in(self._key, self._n)


def _kaiming(key, shape, fan_in):
    return jax.random.normal(key, shape, F32) * math.sqrt(2.0 / fan_in)


def init_raw_conv(pg, cin, cout, ksize):
    kh, kw = ksize if isinstance(ksize, tuple) else (ksize, ksize)
    fan_in = cin * kh * kw
    return {"w": _kaiming(pg.next(), (cout, cin, kh, kw), fan_in),
            "b": jax.random.normal(pg.next(), (cout,), F32) * 0.01}


def init_basic_conv(pg, cin, cout, ksize, output=False):
    p = init_raw_conv(pg, cin, cout, ksize)
    p["output"] = output
    if not output:
        p["gamma"] = jnp.ones((cout,), F32)
        p["beta"] = jnp.zeros((cout,), F32)
    return p


def init_separable(pg, cin, cout, k):
    return {"h": init_raw_conv(pg, cin, cin, (k, 1)),
            "w": init_raw_conv(pg, cin, cout, (1, k)),
            "gamma": jnp.ones((cout,), F32),
            "beta": jnp.zeros((cout,), F32)}


def init_concat_separable(pg, cin, cout, k):
    return {"h": init_raw_conv(pg, cin, cout, (k, 1)),
            "w": init_raw_conv(pg, cin, cout, (1, k)),
            "gamma": jnp.ones((2 * cout,), F32),
            "beta": jnp.zeros((2 * cout,), F32)}


def init_inception(pg, cin, conv1_ch, conv3_red, conv3_ch, dbl_red, dbl_ch,
                   pool_red, stride=1, pool_type="AVG", mode="1"):
    p = {"stride": stride, "pool_type": pool_type, "mode": mode}
    if conv1_ch != 0:
        p["conv1"] = init_basic_conv(pg, cin, conv1_ch, 1)
    p["conv3_reduce"] = init_basic_conv(pg, cin, conv3_red, 1)
    if mode == "1":
        p["conv3"] = init_basic_conv(pg, conv3_red, conv3_ch, 3)
        p["conv3_double1"] = init_basic_conv(pg, dbl_red, dbl_ch, 3)
        p["conv3_double2"] = init_basic_conv(pg, dbl_ch, dbl_ch, 3)
    elif mode == "2":
        p["conv3"] = init_separable(pg, conv3_red, conv3_ch, 7)
        p["conv3_double1"] = init_separable(pg, dbl_red, dbl_ch, 7)
        p["conv3_double2"] = init_separable(pg, dbl_ch, dbl_ch, 7)
    else:  # mode == "3"
        p["conv3"] = init_concat_separable(pg, conv3_red, conv3_ch, 3)
        p["conv3_double1"] = init_basic_conv(pg, dbl_red, dbl_ch, 3)
        p["conv3_double2"] = init_concat_separable(pg, dbl_ch, dbl_ch, 3)
    p["conv3_double_reduce"] = init_basic_conv(pg, cin, dbl_red, 1)
    if pool_red != 0:
        p["pool_reduce"] = init_basic_conv(pg, cin, pool_red, 1)
    return p


def init_aux(pg, cin, num_classes):
    return {"conv1": init_basic_conv(pg, cin, 128, 1),
            "conv2": init_basic_conv(pg, 128, 1024, 5),
            "conv3": init_basic_conv(pg, 1024, num_classes, 1, output=True)}


def init_googlenet(num_classes, mode="train", seed=0):
    pg = _ParamGen(seed)
    params = {
        "mode": mode,
        "stem": [
            init_basic_conv(pg, 3, 32, 3),
            init_basic_conv(pg, 32, 32, 3),
            init_basic_conv(pg, 32, 64, 3),
            init_basic_conv(pg, 64, 80, 3),
            init_basic_conv(pg, 80, 192, 3),
            init_basic_conv(pg, 192, 288, 3),
        ],
        "inceptions": [
            init_inception(pg, 288, 64, 48, 64, 64, 96, 64, mode="1"),
            init_inception(pg, 288, 64, 48, 64, 64, 96, 64, mode="1"),
            init_inception(pg, 288, 0, 128, 384, 64, 96, 0, stride=2, pool_type="MAX", mode="1"),
            init_inception(pg, 768, 192, 128, 192, 128, 192, 192, mode="2"),
            init_inception(pg, 768, 192, 160, 192, 160, 192, 192, mode="2"),
            init_inception(pg, 768, 192, 160, 192, 160, 192, 192, mode="2"),
            init_inception(pg, 768, 192, 192, 192, 192, 192, 192, mode="2"),
            init_inception(pg, 768, 0, 192, 320, 192, 192, 0, stride=2, pool_type="MAX", mode="2"),
            init_inception(pg, 1280, 320, 384, 384, 448, 384, 192, mode="3"),
            init_inception(pg, 2048, 320, 384, 384, 448, 384, 192, pool_type="MAX", mode="3"),
        ],
        "classifier": init_basic_conv(pg, 2048, num_classes, 1, output=True),
    }
    if mode == "train":
        params["aux"] = init_aux(pg, 768, num_classes)
    return params


# ---------------------------------------------------------------------------
# Module application (functional mirrors of the PyTorch classes)
# ---------------------------------------------------------------------------
def _conv_call(w, b, gamma, beta, x, stride, padding, bn_relu):
    sh, sw = stride if isinstance(stride, tuple) else (stride, stride)
    ph, pw = padding if isinstance(padding, tuple) else (padding, padding)
    return _conv2d(x, w, b, gamma, beta, sh=sh, sw=sw, ph=ph, pw=pw, bn_relu=bn_relu)


def apply_basic_conv(p, x, stride=1, padding=0):
    cout = p["w"].shape[0]
    if p.get("output", False):
        return _conv_call(p["w"], p["b"], jnp.ones((cout,), F32),
                          jnp.zeros((cout,), F32), x, stride, padding, False)
    return _conv_call(p["w"], p["b"], p["gamma"], p["beta"], x, stride, padding, True)


def apply_fused_reduce_1x1(p, keys, x):
    """Run several 1x1/stride-1/pad-0 BN+ReLU convs that share the same input as a
    single matmul (weights concatenated along cout), then split per branch."""
    convs = [p[k] for k in keys]
    w = jnp.concatenate([c["w"] for c in convs], axis=0)
    gamma = jnp.concatenate([c["gamma"] for c in convs], axis=0)
    beta = jnp.concatenate([c["beta"] for c in convs], axis=0)
    bias = jnp.zeros((w.shape[0],), F32)   # unused: bias cancels in train-mode BN
    y = _conv_call(w, bias, gamma, beta, x, 1, 0, True)
    outs, off = [], 0
    for c in convs:
        co = c["w"].shape[0]
        outs.append(y[..., off:off + co])
        off += co
    return outs


def apply_separable(p, x, k, stride=1, padding=0):
    # conv_h (k,1) -> conv_w (1,k) -> BN -> ReLU.  conv_h's bias must be added (its
    # contribution through the padded conv_w is not spatially constant); conv_w's
    # bias cancels in BN.
    x = _conv_call(p["h"]["w"], p["h"]["b"],
                   jnp.ones((p["h"]["w"].shape[0],), F32),
                   jnp.zeros((p["h"]["w"].shape[0],), F32),
                   x, (stride, 1), (padding, 0), False)
    x = _conv_call(p["w"]["w"], p["w"]["b"], p["gamma"], p["beta"],
                   x, (1, stride), (0, padding), True)
    return x


def apply_concat_separable(p, x, k, stride=1, padding=0):
    # BN over the concatenation == per-channel BN applied to each half separately.
    cout = p["h"]["w"].shape[0]
    xh = _conv_call(p["h"]["w"], p["h"]["b"], p["gamma"][:cout], p["beta"][:cout],
                    x, (stride, 1), (padding, 0), True)
    xw = _conv_call(p["w"]["w"], p["w"]["b"], p["gamma"][cout:], p["beta"][cout:],
                    x, (1, stride), (0, padding), True)
    return jnp.concatenate([xh, xw], axis=-1)


def apply_inception(p, x):
    stride, mode = p["stride"], p["mode"]
    padding_conv3 = 0 if stride == 2 else 1
    padding_conv7 = 2 if stride == 2 else 3

    # All 1x1 "reduce" convs read the same input x -> one fused matmul.
    keys = (["conv1"] if "conv1" in p else []) + ["conv3_reduce", "conv3_double_reduce"]
    parts = apply_fused_reduce_1x1(p, keys, x)
    if "conv1" in p:
        out_conv1, t, td = parts
    else:
        out_conv1 = None
        t, td = parts

    if mode == "1":
        out_conv3 = apply_basic_conv(p["conv3"], t, stride=stride, padding=padding_conv3)
        td = apply_basic_conv(p["conv3_double1"], td, padding=1)
        out_dbl = apply_basic_conv(p["conv3_double2"], td, stride=stride, padding=padding_conv3)
    elif mode == "2":
        out_conv3 = apply_separable(p["conv3"], t, 7, stride=stride, padding=padding_conv7)
        td = apply_separable(p["conv3_double1"], td, 7, padding=3)
        out_dbl = apply_separable(p["conv3_double2"], td, 7, stride=stride, padding=padding_conv7)
    else:
        out_conv3 = apply_concat_separable(p["conv3"], t, 3, stride=stride, padding=1)
        td = apply_basic_conv(p["conv3_double1"], td, padding=1)
        out_dbl = apply_concat_separable(p["conv3_double2"], td, 3, stride=stride, padding=1)

    pool_mode = "max" if p["pool_type"] == "MAX" else "avg"
    out_pool = _pool2d(x, ksize=3, stride=stride, padding=padding_conv3, mode=pool_mode)
    if "pool_reduce" in p:
        out_pool = apply_basic_conv(p["pool_reduce"], out_pool)

    branches = ([out_conv1] if out_conv1 is not None else []) + [out_conv3, out_dbl, out_pool]
    return jnp.concatenate(branches, axis=-1)


def apply_aux(p, x):
    x = _pool2d(x, ksize=5, stride=3, padding=0, mode="avg")
    x = apply_basic_conv(p["conv1"], x)
    x = apply_basic_conv(p["conv2"], x)
    x = apply_basic_conv(p["conv3"], x)
    return jnp.squeeze(x)   # torch.squeeze: drops all size-1 dims


def googlenet_forward(params, x_nchw):
    # Entry point mirrors the PyTorch module: NCHW input.
    x = jnp.transpose(x_nchw, (0, 2, 3, 1)).astype(F32)   # -> NHWC internally
    stem = params["stem"]
    x = apply_basic_conv(stem[0], x, stride=2)                     # layer 0
    x = apply_basic_conv(stem[1], x)                               # layer 1
    x = apply_basic_conv(stem[2], x, padding=1)                    # layer 2
    x = _pool2d(x, ksize=3, stride=2, padding=0, mode="max")       # layer 3
    x = apply_basic_conv(stem[3], x)                               # layer 4
    x = apply_basic_conv(stem[4], x, stride=2)                     # layer 5
    x = apply_basic_conv(stem[5], x, padding=1)                    # layer 6
    aux = None
    for idx, ip in enumerate(params["inceptions"]):                # layers 7..16
        if idx + 7 == 14 and params["mode"] == "train":
            aux = apply_aux(params["aux"], x)                      # branches off layer-13 output
        x = apply_inception(ip, x)
    x = _pool2d(x, ksize=8, stride=1, padding=0, mode="avg")       # layer 17
    x = apply_basic_conv(params["classifier"], x)                  # layer 18 (output conv)
    x = jnp.squeeze(x)                                             # layer 19 (Squeeze)
    # TODO(synk): BatchNorm running-statistic updates (training-side bookkeeping) are
    # not modeled; they do not affect the forward output.
    if params["mode"] == "train":
        return x, aux
    return x


if __name__ == "__main__":
    num_classes = 10
    batch = 2
    # 299x299 is the smallest spatial size compatible with this architecture's fixed
    # pooling windows (AvgPool2d(8,1) head and AvgPool2d(5,3) aux branch).
    key = jax.random.PRNGKey(0)
    x = jax.random.normal(key, (batch, 3, 299, 299), F32)

    params = init_googlenet(num_classes, mode="train", seed=0)
    logits, aux = googlenet_forward(params, x)
    logits = jax.block_until_ready(logits)
    aux = jax.block_until_ready(aux)

    assert logits.shape == (batch, num_classes), logits.shape
    assert aux.shape == (batch, num_classes), aux.shape
    assert bool(jnp.all(jnp.isfinite(logits))) and bool(jnp.all(jnp.isfinite(aux)))
    print("KERNEL_OK")
</pallas_src>

<mosaic_0001>
module attributes {stable_mosaic.version = 11 : i64} {
  func.func @_conv_matmul_kernel(%arg0: i32, %arg1: i32, %arg2: i32, %arg3: memref<1024x27xbf16, #tpu.memory_space<vmem>>, %arg4: memref<27x128xbf16, #tpu.memory_space<vmem>>, %arg5: memref<1024x128xbf16, #tpu.memory_space<vmem>>, %arg6: memref<1x1x128xf32, #tpu.memory_space<vmem>>, %arg7: memref<1x1x128xf32, #tpu.memory_space<vmem>>, %arg8: memref<1024x128xf32, #tpu.memory_space<vmem>>) attributes {dimension_semantics = [#tpu.dimension_semantics<parallel>, #tpu.dimension_semantics<parallel>, #tpu.dimension_semantics<arbitrary>], iteration_bounds = array<i64: 1, 44, 1>, scalar_prefetch = 0 : i64, scratch_operands = 1 : i64, tpu.core_type = #tpu.core_type<tc>, window_params = [{transform_indices = @transform_0, window_bounds = array<i64: 1024, 27>}, {transform_indices = @transform_1, window_bounds = array<i64: 27, 128>}, {transform_indices = @transform_2, window_bounds = array<i64: 1024, 128>}, {transform_indices = @transform_3, window_bounds = array<i64: 1, 1, 128>}, {transform_indices = @transform_4, window_bounds = array<i64: 1, 1, 128>}]} {
    %c0_i32 = arith.constant 0 : i32
    %0 = arith.cmpi eq, %arg2, %c0_i32 : i32
    %1 = arith.extui %0 : i1 to i32
    %c0_i32_0 = arith.constant 0 : i32
    %2 = arith.cmpi ne, %1, %c0_i32_0 : i32
    scf.if %2 {
      %cst_10 = arith.constant 0.000000e+00 : f32
      %12 = vector.broadcast %cst_10 : f32 to vector<1024x128xf32>
      %c0_11 = arith.constant 0 : index
      %c0_12 = arith.constant 0 : index
      %13 = vector.load %arg8[%c0_11, %c0_12] : memref<1024x128xf32, #tpu.memory_space<vmem>>, vector<1024x128xf32>
      tpu.vector_store %arg8[%c0_11, %c0_12], %12 {strides = array<i32>} : memref<1024x128xf32, #tpu.memory_space<vmem>>, vector<1024x128xf32>,
    } else {
    }
    %c0 = arith.constant 0 : index
    %c0_1 = arith.constant 0 : index
    %3 = vector.load %arg8[%c0, %c0_1] : memref<1024x128xf32, #tpu.memory_space<vmem>>, vector<1024x128xf32>
    %c0_2 = arith.constant 0 : index
    %c0_3 = arith.constant 0 : index
    %4 = vector.load %arg3[%c0_2, %c0_3] : memref<1024x27xbf16, #tpu.memory_space<vmem>>, vector<1024x27xbf16>
    %c0_4 = arith.constant 0 : index
    %c0_5 = arith.constant 0 : index
    %5 = vector.load %arg4[%c0_4, %c0_5] : memref<27x128xbf16, #tpu.memory_space<vmem>>, vector<27x128xbf16>
    %cst = arith.constant dense<0.000000e+00> : vector<1024x128xf32>
    %6 = tpu.matmul %4, %5, %cst {dimension_numbers = #tpu.dot_dimension_numbers<[1], [0], [0], [1], [0, 0, 1, 1], [], []>} : vector<1024x27xbf16>, vector<27x128xbf16>, vector<1024x128xf32> -> vector<1024x128xf32>
    %7 = arith.addf %3, %6 : vector<1024x128xf32>
    %c0_6 = arith.constant 0 : index
    %c0_7 = arith.constant 0 : index
    %8 = vector.load %arg8[%c0_6, %c0_7] : memref<1024x128xf32, #tpu.memory_space<vmem>>, vector<1024x128xf32>
    tpu.vector_store %arg8[%c0_6, %c0_7], %7 {strides = array<i32>} : memref<1024x128xf32, #tpu.memory_space<vmem>>, vector<1024x128xf32>,
    %c0_i32_8 = arith.constant 0 : i32
    %9 = arith.cmpi eq, %arg2, %c0_i32_8 : i32
    %10 = arith.extui %9 : i1 to i32
    %c0_i32_9 = arith.constant 0 : i32
    %11 = arith.cmpi ne, %10, %c0_i32_9 : i32
    scf.if %11 {
      %c0_10 = arith.constant 0 : index
      %c0_11 = arith.constant 0 : index
      %12 = vector.load %arg8[%c0_10, %c0_11] : memref<1024x128xf32, #tpu.memory_space<vmem>>, vector<1024x128xf32>
      %13 = arith.truncf %12 : vector<1024x128xf32> to vector<1024x128xbf16>
      %c0_12 = arith.constant 0 : index
      %c0_13 = arith.constant 0 : index
      %14 = vector.load %arg5[%c0_12, %c0_13] : memref<1024x128xbf16, #tpu.memory_space<vmem>>, vector<1024x128xbf16>
      tpu.vector_store %arg5[%c0_12, %c0_13], %13 {strides = array<i32>} : memref<1024x128xbf16, #tpu.memory_space<vmem>>, vector<1024x128xbf16>,
      %cst_14 = arith.constant dense<0.000000e+00> : vector<128xf32>
      %15 = vector.multi_reduction <add>, %12, %cst_14 [0] : vector<1024x128xf32> to vector<128xf32>
      %16 = vector.shape_cast %15 : vector<128xf32> to vector<1x128xf32>
      %c0_15 = arith.constant 0 : index
      %c0_16 = arith.constant 0 : index
      %c0_17 = arith.constant 0 : index
      %17 = vector.load %arg6[%c0_15, %c0_16, %c0_17] : memref<1x1x128xf32, #tpu.memory_space<vmem>>, vector<1x1x128xf32>
      %18 = vector.shape_cast %17 : vector<1x1x128xf32> to vector<1x128xf32>
      %19 = vector.shape_cast %16 : vector<1x128xf32> to vector<1x1x128xf32>
      tpu.vector_store %arg6[%c0_15, %c0_16, %c0_17], %19 {strides = array<i32>} : memref<1x1x128xf32, #tpu.memory_space<vmem>>, vector<1x1x128xf32>,
      %20 = arith.mulf %12, %12 : vector<1024x128xf32>
      %cst_18 = arith.constant dense<0.000000e+00> : vector<128xf32>
      %21 = vector.multi_reduction <add>, %20, %cst_18 [0] : vector<1024x128xf32> to vector<128xf32>
      %22 = vector.shape_cast %21 : vector<128xf32> to vector<1x128xf32>
      %c0_19 = arith.constant 0 : index
      %c0_20 = arith.constant 0 : index
      %c0_21 = arith.constant 0 : index
      %23 = vector.load %arg7[%c0_19, %c0_20, %c0_21] : memref<1x1x128xf32, #tpu.memory_space<vmem>>, vector<1x1x128xf32>
      %24 = vector.shape_cast %23 : vector<1x1x128xf32> to vector<1x128xf32>
      %25 = vector.shape_cast %22 : vector<1x128xf32> to vector<1x1x128xf32>
      tpu.vector_store %arg7[%c0_19, %c0_20, %c0_21], %25 {strides = array<i32>} : memref<1x1x128xf32, #tpu.memory_space<vmem>>, vector<1x1x128xf32>,
    } else {
    }
    return
  }
  func.func @transform_0(%arg0: i32, %arg1: i32, %arg2: i32) -> (i32, i32) {
    %c0_i32 = arith.constant 0 : i32
    return %arg1, %arg2 : i32, i32
  }
  func.func @transform_1(%arg0: i32, %arg1: i32, %arg2: i32) -> (i32, i32) {
    %c0_i32 = arith.constant 0 : i32
    return %arg2, %arg0 : i32, i32
  }
  func.func @transform_2(%arg0: i32, %arg1: i32, %arg2: i32) -> (i32, i32) {
    %c0_i32 = arith.constant 0 : i32
    return %arg1, %arg0 : i32, i32
  }
  func.func @transform_3(%arg0: i32, %arg1: i32, %arg2: i32) -> (i32, i32, i32) {
    %c0_i32 = arith.constant 0 : i32
    %c0_i32_0 = arith.constant 0 : i32
    return %arg1, %c0_i32, %arg0 : i32, i32, i32
  }
  func.func @transform_4(%arg0: i32, %arg1: i32, %arg2: i32) -> (i32, i32, i32) {
    %c0_i32 = arith.constant 0 : i32
    %c0_i32_0 = arith.constant 0 : i32
    return %arg1, %c0_i32, %arg0 : i32, i32, i32
  }
}

</mosaic_0001>

<bundles_post_ra>
// kernel: _conv2d.1
= control target key start
LH: loop header
LB: loop body
LE: loop exit
PB: predicated region body
PF: predicated region fallthrough
CT: control target
= control target key end

     0   :  { %s4490_s15 = smov 0   ;;  %s4492_s16 = smov 0   ;;  %s5127_s0 = inlined_call_operand.vmem [shape: bf16[45056,27], index: 0, kind: input, shape index: {}]   ;;  %s5128_s1 = inlined_call_operand.vmem [shape: bf16[27,128], index: 1, kind: input, shape index: {}]   ;;  %s5129_s2 = inlined_call_operand.vmem [shape: bf16[45056,128], index: 2, kind: output, shape index: {0}]   ;;  %s5130_s3 = inlined_call_operand.vmem [shape: f32[44,1,128], index: 3, kind: output, shape index: {1}]   ;;  %s5131_s4 = inlined_call_operand.vmem [shape: f32[44,1,128], index: 4, kind: output, shape index: {2}]  }
   0x1   :  { %s4494_s17 = smov 0  }
   0x2 LB: > { %s30_s18 = sadd.s32 1, %s4458_s16  ;;  %p3371_p0 = scmp.ge.s32.totalorder %s4462_s17, 1  ;;  %s4462_s17 = sphi %s4494_s17, %s15_s17   ;;  %s4458_s16 = sphi %s4492_s16, %s5157_s16   ;;  %s4454_s15 = sphi %s4490_s15, %s5156_s15  }
   0x3   : > { %p32_p1 = scmp.ge.s32.totalorder %s30_s18, 44  ;;  %p214_p2 = scmp.lt.s32.totalorder %s4462_s17, 45 }
   0x5   : > { %s5159_s18 = smov (%p32_p1, %s30_s18), 0  ;;  %p215_p3 = pnand %p3371_p0, %p214_p2 }
   0x7   : > { %218 = sbr.rel (%p215_p3) target bundleno = 493 (0x1ed), region = 28 }
   0xc   : > { %v4374_v0 = vld [vmem:[%s5128_s1 + $0x8] sm:$0x3f]   ;;  %vm1222_vm0 = vcmask 1044480   ;;  %vm1223_vm1 = vcmask 1045504   ;;  %v4464_v1 = vmov 65535   ;;  %s3372_s21 = sshll.u32 %s4454_s15, 7 }
   0xd   : > { %v1224_v2 = vsel %vm1222_vm0, 4294967295, %v4464_v1  ;;  %p267_p4 = scmp.lt.s32.totalorder %s3372_s21, 5631  ;;  %v4375_v5 = vld [vmem:[%s5128_s1] sm:$0xff]   ;;  %vm1029_vm2 = vcmask 220160   ;;  %p293_p5 = scmp.lt.s32.totalorder %s4454_s15, 43 }
   0xe   : > { %v1225_v3 = vsel %vm1223_vm1, %v1224_v2, 0 }
   0xf   : > { %v1227_v4 = vand.u32 %v4374_v0, %v1225_v3  ;;  %s5161_s21 = smov (!%p267_p4, %s3372_s21), 5631  ;;  %s5163_s15 = smov (!%p293_p5, %s4454_s15), 43 }
  0x10   : > { %s3373_s24 = sshll.u32 %s5161_s21, 2  ;;  %s298_s7 = scalar_lea.vmem %s5130_s3, %s5163_s15 }
  0x11   : > { %4213 = vmatprep.subr.bf16.mxu0 %v1227_v4  ;;  %4345 = vmatprep.subr.bf16.mxu1 %v1227_v4  ;;  %s4525_s27 = scalar_lea.vmem %s5127_s0, %s3373_s24  ;;  %s4660_s30 = scalar_lea.vmem %s5129_s2, %s3373_s24 }
  0x12   : > { %4214 = vmatpush3.bf16.msra.mxu0 %v1227_v4  ;;  %4347 = vmatpush3.bf16.msra.mxu1 %v1227_v4  ;;  %v4376_v6 = vld [vmem:[%s4525_s27] sm:$0xff]   ;;  %v4377_v7 = vld [vmem:[%s4525_s27 + $0x8] sm:$0xff]   ;;  %v4378_v8 = vld [vmem:[%s4525_s27 + $0x10] sm:$0xff]   ;;  %s304_s10 = scalar_lea.vmem %s5131_s4, %s5163_s15 }
  0x13   : > { %4215 = vmatprep.subr.bf16.mxu0 %v4375_v5  ;;  %4346 = vmatprep.subr.bf16.mxu1 %v4375_v5  ;;  %v4379_v9 = vld [vmem:[%s4525_s27 + $0x18] sm:$0xff]   ;;  %v4380_v10 = vld [vmem:[%s4525_s27 + $0x20] sm:$0xff]   ;;  %v4381_v11 = vld [vmem:[%s4525_s27 + $0x28] sm:$0xff]  }
  0x14   : > { %4217 = vmatprep.mubr.msk.bf16.mxu0 %vm1029_vm2, %v4376_v6  ;;  %v4382_v12 = vld [vmem:[%s4525_s27 + $0x30] sm:$0xff]   ;;  %v4383_v13 = vld [vmem:[%s4525_s27 + $0x38] sm:$0xff]   ;;  %v4384_v14 = vld [vmem:[%s4525_s27 + $0x40] sm:$0xff]  }
  0x15   : > { %v4385_v15 = vld [vmem:[%s4525_s27 + $0x48] sm:$0xff]   ;;  %v4386_v16 = vld [vmem:[%s4525_s27 + $0x50] sm:$0xff]   ;;  %v4408_v17 = vld [vmem:[%s4525_s27 + $0x100] sm:$0xff]  }
  0x16   : > { %4216 = vmatpush3.bf16.msra.mxu0 %v4375_v5  ;;  %4348 = vmatpush3.bf16.msra.mxu1 %v4375_v5  ;;  %v4409_v18 = vld [vmem:[%s4525_s27 + $0x108] sm:$0xff]   ;;  %v4410_v19 = vld [vmem:[%s4525_s27 + $0x110] sm:$0xff]   ;;  %v4411_v20 = vld [vmem:[%s4525_s27 + $0x118] sm:$0xff]  }
  0x17   : > { %4281 = vmatprep.mubr.msk.bf16.mxu1 %vm1029_vm2, %v4408_v17  ;;  %v4412_v21 = vld [vmem:[%s4525_s27 + $0x120] sm:$0xff]   ;;  %v4387_v22 = vld [vmem:[%s4525_s27 + $0x58] sm:$0xff]   ;;  %v4389_v24 = vld [vmem:[%s4525_s27 + $0x68] sm:$0xff]  }
  0x18   : > { %v4388_v23 = vld [vmem:[%s4525_s27 + $0x60] sm:$0xff]   ;;  %v4413_v25 = vld [vmem:[%s4525_s27 + $0x128] sm:$0xff]   ;;  %v4414_v26 = vld [vmem:[%s4525_s27 + $0x130] sm:$0xff]  }
  0x19   : > { %4218 = vmatmul.mubr.msk.bf16.vlgmr.msra.gmra.mxu0 %vm1029_vm2, %v4377_v7  ;;  %4282 = vmatmul.mubr.msk.bf16.vlgmr.msra.gmra.mxu1 %vm1029_vm2, %v4409_v18  ;;  %v4390_v27 = vld [vmem:[%s4525_s27 + $0x70] sm:$0xff]   ;;  %v4415_v28 = vld [vmem:[%s4525_s27 + $0x138] sm:$0xff]   ;;  %v4416_v29 = vld [vmem:[%s4525_s27 + $0x140] sm:$0xff]  }
  0x1a   : > { %4221 = vmatprep.mubr.msk.bf16.mxu0 %vm1029_vm2, %v4378_v8  ;;  %4285 = vmatprep.mubr.msk.bf16.mxu1 %vm1029_vm2, %v4410_v19  ;;  %v4391_v30 = vld [vmem:[%s4525_s27 + $0x78] sm:$0xff]   ;;  %v4392_v31 = vld [vmem:[%s4525_s27 + $0x80] sm:$0xff]   ;;  %v4417_v32 = vld [vmem:[%s4525_s27 + $0x148] sm:$0xff]  }
  0x1b   : > { %v4418_v33 = vld [vmem:[%s4525_s27 + $0x150] sm:$0xff]   ;;  %v4393_v34 = vld [vmem:[%s4525_s27 + $0x88] sm:$0xff]   ;;  %v4419_v36 = vld [vmem:[%s4525_s27 + $0x158] sm:$0xff]  }
  0x1c   : > { %v4394_v35 = vld [vmem:[%s4525_s27 + $0x90] sm:$0xff]   ;;  %v4420_v37 = vld [vmem:[%s4525_s27 + $0x160] sm:$0xff]   ;;  %v4395_v38 = vld [vmem:[%s4525_s27 + $0x98] sm:$0xff]  }
  0x1d   : > { %v4396_v39 = vld [vmem:[%s4525_s27 + $0xa0] sm:$0xff]   ;;  %v4421_v40 = vld [vmem:[%s4525_s27 + $0x168] sm:$0xff]   ;;  %v4422_v41 = vld [vmem:[%s4525_s27 + $0x170] sm:$0xff]  }
  0x1e   : > { %v4397_v42 = vld [vmem:[%s4525_s27 + $0xa8] sm:$0xff]   ;;  %v4398_v43 = vld [vmem:[%s4525_s27 + $0xb0] sm:$0xff]   ;;  %v4423_v44 = vld [vmem:[%s4525_s27 + $0x178] sm:$0xff]  }
  0x1f   : > { %v4424_v45 = vld [vmem:[%s4525_s27 + $0x180] sm:$0xff]   ;;  %v4399_v46 = vld [vmem:[%s4525_s27 + $0xb8] sm:$0xff]   ;;  %v4425_v48 = vld [vmem:[%s4525_s27 + $0x188] sm:$0xff]  }
  0x20   : > { %v4400_v47 = vld [vmem:[%s4525_s27 + $0xc0] sm:$0xff]   ;;  %v4426_v49 = vld [vmem:[%s4525_s27 + $0x190] sm:$0xff]   ;;  %v4401_v50 = vld [vmem:[%s4525_s27 + $0xc8] sm:$0xff]  }
  0x21   : > { %4222 = vmatmul.mubr.msk.bf16.gmra.mxu0 %vm1029_vm2, %v4379_v9  ;;  %4286 = vmatmul.mubr.msk.bf16.gmra.mxu1 %vm1029_vm2, %v4411_v20  ;;  %v4402_v51 = vld [vmem:[%s4525_s27 + $0xd0] sm:$0xff]   ;;  %v4427_v52 = vld [vmem:[%s4525_s27 + $0x198] sm:$0xff]   ;;  %v4428_v53 = vld [vmem:[%s4525_s27 + $0x1a0] sm:$0xff]  }
  0x22   : > { %4225 = vmatprep.mubr.msk.bf16.mxu0 %vm1029_vm2, %v4380_v10  ;;  %4289 = vmatprep.mubr.msk.bf16.mxu1 %vm1029_vm2, %v4412_v21  ;;  %v4403_v54 = vld [vmem:[%s4525_s27 + $0xd8] sm:$0xff]   ;;  %v4404_v55 = vld [vmem:[%s4525_s27 + $0xe0] sm:$0xff]   ;;  %v4429_v56 = vld [vmem:[%s4525_s27 + $0x1a8] sm:$0xff]  }
  0x23   : > { %v4430_v57 = vld [vmem:[%s4525_s27 + $0x1b0] sm:$0xff]   ;;  %v4405_v58 = vld [vmem:[%s4525_s27 + $0xe8] sm:$0xff]   ;;  %v4431_v60 = vld [vmem:[%s4525_s27 + $0x1b8] sm:$0xff]  }
  0x24   : > { %v4406_v59 = vld [vmem:[%s4525_s27 + $0xf0] sm:$0xff]   ;;  %v4432_v61 = vld [vmem:[%s4525_s27 + $0x1c0] sm:$0xff]   ;;  %v4407_v62 = vld [vmem:[%s4525_s27 + $0xf8] sm:$0xff]  }
  0x25   : > { %v4433_v63 = vld [vmem:[%s4525_s27 + $0x1c8] sm:$0xff]   ;;  %v4434_v0 = vld [vmem:[%s4525_s27 + $0x1d0] sm:$0xff]   ;;  %v4435_v1 = vld [vmem:[%s4525_s27 + $0x1d8] sm:$0xff]  }
  0x26   : > { %v4436_v2 = vld [vmem:[%s4525_s27 + $0x1e0] sm:$0xff]   ;;  %v4437_v3 = vld [vmem:[%s4525_s27 + $0x1e8] sm:$0xff]   ;;  %v4438_v4 = vld [vmem:[%s4525_s27 + $0x1f0] sm:$0xff]  }
  0x27   : > { %v4439_v5 = vld [vmem:[%s4525_s27 + $0x1f8] sm:$0xff]  }
  0x29   : > { %4226 = vmatmul.mubr.msk.bf16.gmra.mxu0 %vm1029_vm2, %v4381_v11  ;;  %4290 = vmatmul.mubr.msk.bf16.gmra.mxu1 %vm1029_vm2, %v4413_v25 }
  0x2a   : > { %4229 = vmatprep.mubr.msk.bf16.mxu0 %vm1029_vm2, %v4382_v12  ;;  %4293 = vmatprep.mubr.msk.bf16.mxu1 %vm1029_vm2, %v4414_v26 }
  0x31   : > { %4230 = vmatmul.mubr.msk.bf16.gmra.mxu0 %vm1029_vm2, %v4383_v13  ;;  %4294 = vmatmul.mubr.msk.bf16.gmra.mxu1 %vm1029_vm2, %v4415_v28 }
  0x32   : > { %4233 = vmatprep.mubr.msk.bf16.mxu0 %vm1029_vm2, %v4384_v14  ;;  %4297 = vmatprep.mubr.msk.bf16.mxu1 %vm1029_vm2, %v4416_v29 }
  0x39   : > { %4234 = vmatmul.mubr.msk.bf16.gmra.mxu0 %vm1029_vm2, %v4385_v15  ;;  %4298 = vmatmul.mubr.msk.bf16.gmra.mxu1 %vm1029_vm2, %v4417_v32 }
  0x3a   : > { %4237 = vmatprep.mubr.msk.bf16.mxu0 %vm1029_vm2, %v4386_v16  ;;  %4301 = vmatprep.mubr.msk.bf16.mxu1 %vm1029_vm2, %v4418_v33 }
  0x41   : > { %4238 = vmatmul.mubr.msk.bf16.gmra.mxu0 %vm1029_vm2, %v4387_v22  ;;  %4302 = vmatmul.mubr.msk.bf16.gmra.mxu1 %vm1029_vm2, %v4419_v36 }
  0x42   : > { %4241 = vmatprep.mubr.msk.bf16.mxu0 %vm1029_vm2, %v4388_v23  ;;  %4305 = vmatprep.mubr.msk.bf16.mxu1 %vm1029_vm2, %v4420_v37 }
  0x49   : > { %4242 = vmatmul.mubr.msk.bf16.gmra.mxu0 %vm1029_vm2, %v4389_v24  ;;  %4306 = vmatmul.mubr.msk.bf16.gmra.mxu1 %vm1029_vm2, %v4421_v40 }
  0x4a   : > { %4245 = vmatprep.mubr.msk.bf16.mxu0 %vm1029_vm2, %v4390_v27  ;;  %4309 = vmatprep.mubr.msk.bf16.mxu1 %vm1029_vm2, %v4422_v41 }
  0x51   : > { %4246 = vmatmul.mubr.msk.bf16.gmra.mxu0 %vm1029_vm2, %v4391_v30  ;;  %4310 = vmatmul.mubr.msk.bf16.gmra.mxu1 %vm1029_vm2, %v4423_v44 }
  0x52   : > { %4249 = vmatprep.mubr.msk.bf16.mxu0 %vm1029_vm2, %v4392_v31  ;;  %4313 = vmatprep.mubr.msk.bf16.mxu1 %vm1029_vm2, %v4424_v45 }
  0x59   : > { %4250 = vmatmul.mubr.msk.bf16.gmra.mxu0 %vm1029_vm2, %v4393_v34  ;;  %4314 = vmatmul.mubr.msk.bf16.gmra.mxu1 %vm1029_vm2, %v4425_v48 }
  0x5a   : > { %4253 = vmatprep.mubr.msk.bf16.mxu0 %vm1029_vm2, %v4394_v35  ;;  %4317 = vmatprep.mubr.msk.bf16.mxu1 %vm1029_vm2, %v4426_v49 }
  0x61   : > { %4254 = vmatmul.mubr.msk.bf16.gmra.mxu0 %vm1029_vm2, %v4395_v38  ;;  %4318 = vmatmul.mubr.msk.bf16.gmra.mxu1 %vm1029_vm2, %v4427_v52 }
  0x62   : > { %4257 = vmatprep.mubr.msk.bf16.mxu0 %vm1029_vm2, %v4396_v39  ;;  %4321 = vmatprep.mubr.msk.bf16.mxu1 %vm1029_vm2, %v4428_v53 }
  0x69   : > { %4258 = vmatmul.mubr.msk.bf16.gmra.mxu0 %vm1029_vm2, %v4397_v42  ;;  %4322 = vmatmul.mubr.msk.bf16.gmra.mxu1 %vm1029_vm2, %v4429_v56 }
  0x6a   : > { %4261 = vmatprep.mubr.msk.bf16.mxu0 %vm1029_vm2, %v4398_v43  ;;  %4325 = vmatprep.mubr.msk.bf16.mxu1 %vm1029_vm2, %v4430_v57 }
  0x71   : > { %4262 = vmatmul.mubr.msk.bf16.gmra.mxu0 %vm1029_vm2, %v4399_v46  ;;  %4326 = vmatmul.mubr.msk.bf16.gmra.mxu1 %vm1029_vm2, %v4431_v60 }
  0x72   : > { %4265 = vmatprep.mubr.msk.bf16.mxu0 %vm1029_vm2, %v4400_v47  ;;  %4329 = vmatprep.mubr.msk.bf16.mxu1 %vm1029_vm2, %v4432_v61 }
  0x79   : > { %4266 = vmatmul.mubr.msk.bf16.gmra.mxu0 %vm1029_vm2, %v4401_v50  ;;  %4330 = vmatmul.mubr.msk.bf16.gmra.mxu1 %vm1029_vm2, %v4433_v63 }
  0x7a   : > { %4269 = vmatprep.mubr.msk.bf16.mxu0 %vm1029_vm2, %v4402_v51  ;;  %4333 = vmatprep.mubr.msk.bf16.mxu1 %vm1029_vm2, %v4434_v0 }
  0x81   : > { %4270 = vmatmul.mubr.msk.bf16.gmra.mxu0 %vm1029_vm2, %v4403_v54  ;;  %4334 = vmatmul.mubr.msk.bf16.gmra.mxu1 %vm1029_vm2, %v4435_v1 }
  0x82   : > { %4273 = vmatprep.mubr.msk.bf16.mxu0 %vm1029_vm2, %v4404_v55  ;;  %4337 = vmatprep.mubr.msk.bf16.mxu1 %vm1029_vm2, %v4436_v2 }
  0x89   : > { %4274 = vmatmul.mubr.msk.bf16.gmra.mxu0 %vm1029_vm2, %v4405_v58  ;;  %4338 = vmatmul.mubr.msk.bf16.gmra.mxu1 %vm1029_vm2, %v4437_v3 }
  0x8a   : > { %4277 = vmatprep.mubr.msk.bf16.mxu0 %vm1029_vm2, %v4406_v59  ;;  %4341 = vmatprep.mubr.msk.bf16.mxu1 %vm1029_vm2, %v4438_v4 }
  0x91   : > { %4278 = vmatmul.mubr.msk.bf16.gmra.mxu0 %vm1029_vm2, %v4407_v62  ;;  %4342 = vmatmul.mubr.msk.bf16.gmra.mxu1 %vm1029_vm2, %v4439_v5 }
  0xd9   : > { %v4219_v6 = vpop.f32.mrf.mxu0  ;;  %v4668_v1 = vpop.f32.mrf.mxu1 }
  0xda   : > { %v2937_v16 = vmul.f32 %v4219_v6, %v4219_v6 }
  0xdb   : > { %v1263_v7 = vpop.f32.mrf.mxu0 }
  0xdc   : > { %v2935_v11 = vmul.f32 %v1263_v7, %v1263_v7 }
  0xdd   : > { %v4220_v8 = vpop.f32.mrf.mxu0 }
  0xde   : > { %v3772_v9 = vpack.c.bf16 %v4220_v8, %v4219_v6  ;;  %v2938_v20 = vmul.f32 %v4220_v8, %v4220_v8 }
  0xdf   : > { %v1266_v10 = vpop.f32.mrf.mxu0 }
  0xe0   : > { %4084 = vst [vmem:[%s4660_s30 + $0x8] sm:$0xff] %v3772_v9   ;;  %v3767_v12 = vpack.c.bf16 %v1266_v10, %v1263_v7  ;;  %v2801_v13 = vadd.f32 %v1266_v10, %v1263_v7  ;;  %v2936_v14 = vmul.f32 %v1266_v10, %v1266_v10  ;;  %v4671_v7 = vpop.f32.mrf.mxu1 }
  0xe1   : > { %v4223_v15 = vpop.f32.mrf.mxu0 }
  0xe2   : > { %3768 = vst [vmem:[%s4660_s30] sm:$0xff] %v3767_v12   ;;  %v2802_v17 = vadd.f32 %v4219_v6, %v2801_v13  ;;  %v3063_v18 = vadd.f32 %v2936_v14, %v2935_v11  ;;  %v2941_v34 = vmul.f32 %v4223_v15, %v4223_v15  ;;  %v4674_v12 = vpop.f32.mrf.mxu1 }
  0xe3   : > { %v1279_v19 = vpop.f32.mrf.mxu0 }
  0xe4   : > { %v3064_v21 = vadd.f32 %v3063_v18, %v2937_v16  ;;  %v2803_v22 = vadd.f32 %v4220_v8, %v2802_v17  ;;  %v2939_v25 = vmul.f32 %v1279_v19, %v1279_v19  ;;  %v3932_v16 = vpack.c.bf16 %v4674_v12, %v4668_v1  ;;  %v4678_v18 = vpop.f32.mrf.mxu1 }
  0xe5   : > { %v4224_v23 = vpop.f32.mrf.mxu0 }
  0xe6   : > { %v2804_v24 = vadd.f32 %v2803_v22, %v1279_v19  ;;  %v3065_v26 = vadd.f32 %v3064_v21, %v2938_v20  ;;  %v3782_v27 = vpack.c.bf16 %v4224_v23, %v4223_v15  ;;  %v2942_v38 = vmul.f32 %v4224_v23, %v4224_v23  ;;  %4116 = vst [vmem:[%s4660_s30 + $0x108] sm:$0xff] %v3932_v16  }
  0xe7   : > { %v1282_v28 = vpop.f32.mrf.mxu0 }
  0xe8   : > { %v3066_v29 = vadd.f32 %v3065_v26, %v2939_v25  ;;  %4086 = vst [vmem:[%s4660_s30 + $0x18] sm:$0xff] %v3782_v27   ;;  %v3777_v30 = vpack.c.bf16 %v1282_v28, %v1279_v19  ;;  %v2805_v31 = vadd.f32 %v2804_v24, %v1282_v28  ;;  %v2940_v32 = vmul.f32 %v1282_v28, %v1282_v28  ;;  %v4683_v25 = vpop.f32.mrf.mxu1 }
  0xe9   : > { %v4227_v33 = vpop.f32.mrf.mxu0  ;;  %v3927_v24 = vpack.c.bf16 %v4678_v18, %v4671_v7 }
  0xea   : > { %4085 = vst [vmem:[%s4660_s30 + $0x10] sm:$0xff] %v3777_v30   ;;  %v2806_v35 = vadd.f32 %v4223_v15, %v2805_v31  ;;  %v3067_v36 = vadd.f32 %v3066_v29, %v2940_v32  ;;  %v2945_v52 = vmul.f32 %v4227_v33, %v4227_v33  ;;  %v4687_v31 = vpop.f32.mrf.mxu1 }
  0xeb   : > { %v1295_v37 = vpop.f32.mrf.mxu0  ;;  %4115 = vst [vmem:[%s4660_s30 + $0x100] sm:$0xff] %v3927_v24  }
  0xec   : > { %v3068_v39 = vadd.f32 %v3067_v36, %v2941_v34  ;;  %v2807_v40 = vadd.f32 %v4224_v23, %v2806_v35  ;;  %v2943_v43 = vmul.f32 %v1295_v37, %v1295_v37  ;;  %v4690_v36 = vpop.f32.mrf.mxu1 }
  0xed   : > { %v4228_v41 = vpop.f32.mrf.mxu0 }
  0xee   : > { %v2808_v42 = vadd.f32 %v2807_v40, %v1295_v37  ;;  %v3069_v44 = vadd.f32 %v3068_v39, %v2942_v38  ;;  %v3792_v45 = vpack.c.bf16 %v4228_v41, %v4227_v33  ;;  %v2946_v56 = vmul.f32 %v4228_v41, %v4228_v41 }
  0xef   : > { %v1298_v46 = vpop.f32.mrf.mxu0  ;;  %v3942_v40 = vpack.c.bf16 %v4690_v36, %v4683_v25 }
  0xf0   : > { %v3070_v47 = vadd.f32 %v3069_v44, %v2943_v43  ;;  %4088 = vst [vmem:[%s4660_s30 + $0x28] sm:$0xff] %v3792_v45   ;;  %v3787_v48 = vpack.c.bf16 %v1298_v46, %v1295_v37  ;;  %v2809_v49 = vadd.f32 %v2808_v42, %v1298_v46  ;;  %v2944_v50 = vmul.f32 %v1298_v46, %v1298_v46  ;;  %v4694_v42 = vpop.f32.mrf.mxu1 }
  0xf1   : > { %v4231_v51 = vpop.f32.mrf.mxu0  ;;  %4118 = vst [vmem:[%s4660_s30 + $0x118] sm:$0xff] %v3942_v40  }
  0xf2   : > { %4087 = vst [vmem:[%s4660_s30 + $0x20] sm:$0xff] %v3787_v48   ;;  %v2810_v53 = vadd.f32 %v4227_v33, %v2809_v49  ;;  %v3071_v54 = vadd.f32 %v3070_v47, %v2944_v50  ;;  %v2949_v8 = vmul.f32 %v4231_v51, %v4231_v51  ;;  %v3937_v48 = vpack.c.bf16 %v4694_v42, %v4687_v31  ;;  %v4699_v49 = vpop.f32.mrf.mxu1 }
  0xf3   : > { %v1311_v55 = vpop.f32.mrf.mxu0 }
  0xf4   : > { %v3072_v57 = vadd.f32 %v3071_v54, %v2945_v52  ;;  %v2811_v58 = vadd.f32 %v4228_v41, %v2810_v53  ;;  %v2947_v61 = vmul.f32 %v1311_v55, %v1311_v55  ;;  %4117 = vst [vmem:[%s4660_s30 + $0x110] sm:$0xff] %v3937_v48  }
  0xf5   : > { %v4232_v59 = vpop.f32.mrf.mxu0 }
  0xf6   : > { %v2812_v60 = vadd.f32 %v2811_v58, %v1311_v55  ;;  %v3073_v62 = vadd.f32 %v3072_v57, %v2946_v56  ;;  %v3802_v63 = vpack.c.bf16 %v4232_v59, %v4231_v51  ;;  %v2950_v13 = vmul.f32 %v4232_v59, %v4232_v59 }
  0xf7   : > { %v1314_v0 = vpop.f32.mrf.mxu0 }
  0xf8   : > { %v3074_v2 = vadd.f32 %v3073_v62, %v2947_v61  ;;  %4090 = vst [vmem:[%s4660_s30 + $0x38] sm:$0xff] %v3802_v63   ;;  %v3797_v3 = vpack.c.bf16 %v1314_v0, %v1311_v55  ;;  %v2813_v4 = vadd.f32 %v2812_v60, %v1314_v0  ;;  %v2948_v5 = vmul.f32 %v1314_v0, %v1314_v0  ;;  %v4703_v55 = vpop.f32.mrf.mxu1 }
  0xf9   : > { %v4235_v6 = vpop.f32.mrf.mxu0 }
  0xfa   : > { %4089 = vst [vmem:[%s4660_s30 + $0x30] sm:$0xff] %v3797_v3   ;;  %v2814_v9 = vadd.f32 %v4231_v51, %v2813_v4  ;;  %v3075_v10 = vadd.f32 %v3074_v2, %v2948_v5  ;;  %v2953_v32 = vmul.f32 %v4235_v6, %v4235_v6  ;;  %v4706_v60 = vpop.f32.mrf.mxu1 }
  0xfb   : > { %v1327_v11 = vpop.f32.mrf.mxu0  ;;  %v3952_v0 = vpack.c.bf16 %v4706_v60, %v4699_v49 }
  0xfc   : > { %v3076_v14 = vadd.f32 %v3075_v10, %v2949_v8  ;;  %v2815_v15 = vadd.f32 %v4232_v59, %v2814_v9  ;;  %v2951_v20 = vmul.f32 %v1327_v11, %v1327_v11  ;;  %v4710_v3 = vpop.f32.mrf.mxu1 }
  0xfd   : > { %v4236_v17 = vpop.f32.mrf.mxu0  ;;  %4120 = vst [vmem:[%s4660_s30 + $0x128] sm:$0xff] %v3952_v0   ;;  %v3947_v10 = vpack.c.bf16 %v4710_v3, %v4703_v55 }
  0xfe   : > { %v2816_v19 = vadd.f32 %v2815_v15, %v1327_v11  ;;  %v3077_v21 = vadd.f32 %v3076_v14, %v2950_v13  ;;  %v3812_v22 = vpack.c.bf16 %v4236_v17, %v4235_v6  ;;  %v2954_v37 = vmul.f32 %v4236_v17, %v4236_v17 }
  0xff   : > { %v1330_v23 = vpop.f32.mrf.mxu0  ;;  %4119 = vst [vmem:[%s4660_s30 + $0x120] sm:$0xff] %v3947_v10  }
 0x100   : > { %v3078_v26 = vadd.f32 %v3077_v21, %v2951_v20  ;;  %4092 = vst [vmem:[%s4660_s30 + $0x48] sm:$0xff] %v3812_v22   ;;  %v3807_v27 = vpack.c.bf16 %v1330_v23, %v1327_v11  ;;  %v2817_v28 = vadd.f32 %v2816_v19, %v1330_v23  ;;  %v2952_v29 = vmul.f32 %v1330_v23, %v1330_v23  ;;  %v4715_v11 = vpop.f32.mrf.mxu1 }
 0x101   : > { %v4239_v30 = vpop.f32.mrf.mxu0 }
 0x102   : > { %4091 = vst [vmem:[%s4660_s30 + $0x40] sm:$0xff] %v3807_v27   ;;  %v2818_v33 = vadd.f32 %v4235_v6, %v2817_v28  ;;  %v3079_v34 = vadd.f32 %v3078_v26, %v2952_v29  ;;  %v2957_v56 = vmul.f32 %v4239_v30, %v4239_v30  ;;  %v4719_v19 = vpop.f32.mrf.mxu1 }
 0x103   : > { %v1343_v35 = vpop.f32.mrf.mxu0 }
 0x104   : > { %v3080_v38 = vadd.f32 %v3079_v34, %v2953_v32  ;;  %v2819_v39 = vadd.f32 %v4236_v17, %v2818_v33  ;;  %v2955_v44 = vmul.f32 %v1343_v35, %v1343_v35  ;;  %v4722_v24 = vpop.f32.mrf.mxu1 }
 0x105   : > { %v4240_v41 = vpop.f32.mrf.mxu0  ;;  %v3962_v29 = vpack.c.bf16 %v4722_v24, %v4715_v11 }
 0x106   : > { %v2820_v43 = vadd.f32 %v2819_v39, %v1343_v35  ;;  %v3081_v45 = vadd.f32 %v3080_v38, %v2954_v37  ;;  %v3822_v46 = vpack.c.bf16 %v4240_v41, %v4239_v30  ;;  %v2958_v61 = vmul.f32 %v4240_v41, %v4240_v41  ;;  %v4726_v32 = vpop.f32.mrf.mxu1 }
 0x107   : > { %v1346_v47 = vpop.f32.mrf.mxu0  ;;  %4122 = vst [vmem:[%s4660_s30 + $0x138] sm:$0xff] %v3962_v29   ;;  %v3957_v39 = vpack.c.bf16 %v4726_v32, %v4719_v19 }
 0x108   : > { %v3082_v50 = vadd.f32 %v3081_v45, %v2955_v44  ;;  %4094 = vst [vmem:[%s4660_s30 + $0x58] sm:$0xff] %v3822_v46   ;;  %v3817_v51 = vpack.c.bf16 %v1346_v47, %v1343_v35  ;;  %v2821_v52 = vadd.f32 %v2820_v43, %v1346_v47  ;;  %v2956_v53 = vmul.f32 %v1346_v47, %v1346_v47  ;;  %v4731_v40 = vpop.f32.mrf.mxu1 }
 0x109   : > { %v4243_v54 = vpop.f32.mrf.mxu0  ;;  %4121 = vst [vmem:[%s4660_s30 + $0x130] sm:$0xff] %v3957_v39  }
 0x10a   : > { %4093 = vst [vmem:[%s4660_s30 + $0x50] sm:$0xff] %v3817_v51   ;;  %v2822_v57 = vadd.f32 %v4239_v30, %v2821_v52  ;;  %v3083_v58 = vadd.f32 %v3082_v50, %v2956_v53  ;;  %v2961_v20 = vmul.f32 %v4243_v54, %v4243_v54  ;;  %v4735_v47 = vpop.f32.mrf.mxu1 }
 0x10b   : > { %v1359_v59 = vpop.f32.mrf.mxu0 }
 0x10c   : > { %v3084_v62 = vadd.f32 %v3083_v58, %v2957_v56  ;;  %v2823_v63 = vadd.f32 %v4240_v41, %v2822_v57  ;;  %v2959_v5 = vmul.f32 %v1359_v59, %v1359_v59  ;;  %v4738_v53 = vpop.f32.mrf.mxu1 }
 0x10d   : > { %v4244_v2 = vpop.f32.mrf.mxu0  ;;  %v3972_v58 = vpack.c.bf16 %v4738_v53, %v4731_v40 }
 0x10e   : > { %v2824_v4 = vadd.f32 %v2823_v63, %v1359_v59  ;;  %v3085_v6 = vadd.f32 %v3084_v62, %v2958_v61  ;;  %v3832_v8 = vpack.c.bf16 %v4244_v2, %v4243_v54  ;;  %v2962_v26 = vmul.f32 %v4244_v2, %v4244_v2  ;;  %v4742_v61 = vpop.f32.mrf.mxu1 }
 0x10f   : > { %v1362_v9 = vpop.f32.mrf.mxu0  ;;  %4124 = vst [vmem:[%s4660_s30 + $0x148] sm:$0xff] %v3972_v58  }
 0x110   : > { %v3086_v13 = vadd.f32 %v3085_v6, %v2959_v5  ;;  %4096 = vst [vmem:[%s4660_s30 + $0x68] sm:$0xff] %v3832_v8   ;;  %v3827_v14 = vpack.c.bf16 %v1362_v9, %v1359_v59  ;;  %v2825_v15 = vadd.f32 %v2824_v4, %v1362_v9  ;;  %v2960_v16 = vmul.f32 %v1362_v9, %v1362_v9  ;;  %v4747_v6 = vpop.f32.mrf.mxu1 }
 0x111   : > { %v4247_v17 = vpop.f32.mrf.mxu0  ;;  %v3967_v5 = vpack.c.bf16 %v4742_v61, %v4735_v47 }
 0x112   : > { %4095 = vst [vmem:[%s4660_s30 + $0x60] sm:$0xff] %v3827_v14   ;;  %v2826_v21 = vadd.f32 %v4243_v54, %v2825_v15  ;;  %v3087_v22 = vadd.f32 %v3086_v13, %v2960_v16  ;;  %v2965_v48 = vmul.f32 %v4247_v17, %v4247_v17  ;;  %v4751_v15 = vpop.f32.mrf.mxu1 }
 0x113   : > { %v1375_v23 = vpop.f32.mrf.mxu0  ;;  %4123 = vst [vmem:[%s4660_s30 + $0x140] sm:$0xff] %v3967_v5  }
 0x114   : > { %v3088_v27 = vadd.f32 %v3087_v22, %v2961_v20  ;;  %v2827_v28 = vadd.f32 %v4244_v2, %v2826_v21  ;;  %v2963_v34 = vmul.f32 %v1375_v23, %v1375_v23  ;;  %v4754_v22 = vpop.f32.mrf.mxu1 }
 0x115   : > { %v4248_v30 = vpop.f32.mrf.mxu0 }
 0x116   : > { %v2828_v33 = vadd.f32 %v2827_v28, %v1375_v23  ;;  %v3089_v35 = vadd.f32 %v3088_v27, %v2962_v26  ;;  %v3842_v37 = vpack.c.bf16 %v4248_v30, %v4247_v17  ;;  %v2966_v54 = vmul.f32 %v4248_v30, %v4248_v30 }
 0x117   : > { %v1378_v38 = vpop.f32.mrf.mxu0  ;;  %v3982_v28 = vpack.c.bf16 %v4754_v22, %v4747_v6 }
 0x118   : > { %v3090_v41 = vadd.f32 %v3089_v35, %v2963_v34  ;;  %4098 = vst [vmem:[%s4660_s30 + $0x78] sm:$0xff] %v3842_v37   ;;  %v3837_v43 = vpack.c.bf16 %v1378_v38, %v1375_v23  ;;  %v2829_v44 = vadd.f32 %v2828_v33, %v1378_v38  ;;  %v2964_v45 = vmul.f32 %v1378_v38, %v1378_v38 }
 0x119   : > { %v4251_v46 = vpop.f32.mrf.mxu0  ;;  %4126 = vst [vmem:[%s4660_s30 + $0x158] sm:$0xff] %v3982_v28  }
 0x11a   : > { %4097 = vst [vmem:[%s4660_s30 + $0x70] sm:$0xff] %v3837_v43   ;;  %v2830_v50 = vadd.f32 %v4247_v17, %v2829_v44  ;;  %v3091_v51 = vadd.f32 %v3090_v41, %v2964_v45  ;;  %v2969_v16 = vmul.f32 %v4251_v46, %v4251_v46 }
 0x11b   : > { %v1391_v52 = vpop.f32.mrf.mxu0 }
 0x11c   : > { %v3092_v56 = vadd.f32 %v3091_v51, %v2965_v48  ;;  %v2831_v57 = vadd.f32 %v4248_v30, %v2830_v50  ;;  %v2967_v63 = vmul.f32 %v1391_v52, %v1391_v52  ;;  %v4758_v30 = vpop.f32.mrf.mxu1 }
 0x11d   : > { %v4252_v59 = vpop.f32.mrf.mxu0  ;;  %v3977_v39 = vpack.c.bf16 %v4758_v30, %v4751_v15 }
 0x11e   : > { %v2832_v62 = vadd.f32 %v2831_v57, %v1391_v52  ;;  %v3093_v0 = vadd.f32 %v3092_v56, %v2966_v54  ;;  %v3852_v2 = vpack.c.bf16 %v4252_v59, %v4251_v46  ;;  %v2970_v23 = vmul.f32 %v4252_v59, %v4252_v59  ;;  %v4763_v41 = vpop.f32.mrf.mxu1 }
 0x11f   : > { %v1394_v4 = vpop.f32.mrf.mxu0  ;;  %4125 = vst [vmem:[%s4660_s30 + $0x150] sm:$0xff] %v3977_v39  }
 0x120   : > { %v3094_v8 = vadd.f32 %v3093_v0, %v2967_v63  ;;  %4100 = vst [vmem:[%s4660_s30 + $0x88] sm:$0xff] %v3852_v2   ;;  %v3847_v9 = vpack.c.bf16 %v1394_v4, %v1391_v52  ;;  %v2833_v10 = vadd.f32 %v2832_v62, %v1394_v4  ;;  %v2968_v13 = vmul.f32 %v1394_v4, %v1394_v4  ;;  %v4767_v50 = vpop.f32.mrf.mxu1 }
 0x121   : > { %v4255_v14 = vpop.f32.mrf.mxu0 }
 0x122   : > { %4099 = vst [vmem:[%s4660_s30 + $0x80] sm:$0xff] %v3847_v9   ;;  %v2834_v17 = vadd.f32 %v4251_v46, %v2833_v10  ;;  %v3095_v20 = vadd.f32 %v3094_v8, %v2968_v13  ;;  %v2973_v51 = vmul.f32 %v4255_v14, %v4255_v14  ;;  %v4770_v57 = vpop.f32.mrf.mxu1 }
 0x123   : > { %v1407_v21 = vpop.f32.mrf.mxu0  ;;  %v3992_v63 = vpack.c.bf16 %v4770_v57, %v4763_v41 }
 0x124   : > { %v3096_v26 = vadd.f32 %v3095_v20, %v2969_v16  ;;  %v2835_v27 = vadd.f32 %v4252_v59, %v2834_v17  ;;  %v2971_v34 = vmul.f32 %v1407_v21, %v1407_v21  ;;  %v4774_v2 = vpop.f32.mrf.mxu1 }
 0x125   : > { %v4256_v29 = vpop.f32.mrf.mxu0  ;;  %4128 = vst [vmem:[%s4660_s30 + $0x168] sm:$0xff] %v3992_v63   ;;  %v3987_v13 = vpack.c.bf16 %v4774_v2, %v4767_v50 }
 0x126   : > { %v2836_v33 = vadd.f32 %v2835_v27, %v1407_v21  ;;  %v3097_v35 = vadd.f32 %v3096_v26, %v2970_v23  ;;  %v3862_v37 = vpack.c.bf16 %v4256_v29, %v4255_v14  ;;  %v2974_v58 = vmul.f32 %v4256_v29, %v4256_v29 }
 0x127   : > { %v1410_v38 = vpop.f32.mrf.mxu0  ;;  %4127 = vst [vmem:[%s4660_s30 + $0x160] sm:$0xff] %v3987_v13  }
 0x128   : > { %v3098_v43 = vadd.f32 %v3097_v35, %v2971_v34  ;;  %4102 = vst [vmem:[%s4660_s30 + $0x98] sm:$0xff] %v3862_v37   ;;  %v3857_v44 = vpack.c.bf16 %v1410_v38, %v1407_v21  ;;  %v2837_v45 = vadd.f32 %v2836_v33, %v1410_v38  ;;  %v2972_v46 = vmul.f32 %v1410_v38, %v1410_v38 }
 0x129   : > { %v4259_v48 = vpop.f32.mrf.mxu0 }
 0x12a   : > { %4101 = vst [vmem:[%s4660_s30 + $0x90] sm:$0xff] %v3857_v44   ;;  %v2838_v52 = vadd.f32 %v4255_v14, %v2837_v45  ;;  %v3099_v54 = vadd.f32 %v3098_v43, %v2972_v46  ;;  %v4779_v14 = vpop.f32.mrf.mxu1  ;;  %v2977_v27 = vmul.f32 %v4259_v48, %v4259_v48 }
 0x12b   : > { %v1423_v56 = vpop.f32.mrf.mxu0 }
 0x12c   : > { %v3100_v59 = vadd.f32 %v3099_v54, %v2973_v51  ;;  %v2839_v62 = vadd.f32 %v4256_v29, %v2838_v52  ;;  %v2975_v5 = vmul.f32 %v1423_v56, %v1423_v56  ;;  %v4783_v26 = vpop.f32.mrf.mxu1 }
 0x12d   : > { %v4260_v0 = vpop.f32.mrf.mxu0 }
 0x12e   : > { %v2840_v4 = vadd.f32 %v2839_v62, %v1423_v56  ;;  %v3101_v8 = vadd.f32 %v3100_v59, %v2974_v58  ;;  %v3872_v9 = vpack.c.bf16 %v4260_v0, %v4259_v48  ;;  %v4786_v34 = vpop.f32.mrf.mxu1  ;;  %v2978_v35 = vmul.f32 %v4260_v0, %v4260_v0 }
 0x12f   : > { %v1426_v10 = vpop.f32.mrf.mxu0  ;;  %v4002_v39 = vpack.c.bf16 %v4786_v34, %v4779_v14 }
 0x130   : > { %v3102_v16 = vadd.f32 %v3101_v8, %v2975_v5  ;;  %4104 = vst [vmem:[%s4660_s30 + $0xa8] sm:$0xff] %v3872_v9   ;;  %v3867_v17 = vpack.c.bf16 %v1426_v10, %v1423_v56  ;;  %v2841_v20 = vadd.f32 %v2840_v4, %v1426_v10  ;;  %v2976_v21 = vmul.f32 %v1426_v10, %v1426_v10  ;;  %v4790_v44 = vpop.f32.mrf.mxu1 }
 0x131   : > { %v4263_v23 = vpop.f32.mrf.mxu0  ;;  %4130 = vst [vmem:[%s4660_s30 + $0x178] sm:$0xff] %v4002_v39   ;;  %v3997_v54 = vpack.c.bf16 %v4790_v44, %v4783_v26 }
 0x132   : > { %4103 = vst [vmem:[%s4660_s30 + $0xa0] sm:$0xff] %v3867_v17   ;;  %v2842_v28 = vadd.f32 %v4259_v48, %v2841_v20  ;;  %v3103_v29 = vadd.f32 %v3102_v16, %v2976_v21  ;;  %v4795_v56 = vpop.f32.mrf.mxu1  ;;  %v2981_v5 = vmul.f32 %v4263_v23, %v4263_v23 }
 0x133   : > { %v1439_v33 = vpop.f32.mrf.mxu0  ;;  %4129 = vst [vmem:[%s4660_s30 + $0x170] sm:$0xff] %v3997_v54  }
 0x134   : > { %v3104_v37 = vadd.f32 %v3103_v29, %v2977_v27  ;;  %v2843_v38 = vadd.f32 %v4260_v0, %v2842_v28  ;;  %v2979_v46 = vmul.f32 %v1439_v33, %v1439_v33  ;;  %v4799_v4 = vpop.f32.mrf.mxu1 }
 0x135   : > { %v4264_v43 = vpop.f32.mrf.mxu0 }
 0x136   : > { %v2844_v45 = vadd.f32 %v2843_v38, %v1439_v33  ;;  %v3105_v51 = vadd.f32 %v3104_v37, %v2978_v35  ;;  %v3882_v48 = vpack.c.bf16 %v4264_v43, %v4263_v23  ;;  %v4802_v13 = vpop.f32.mrf.mxu1  ;;  %v2982_v16 = vmul.f32 %v4264_v43, %v4264_v43 }
 0x137   : > { %v1442_v52 = vpop.f32.mrf.mxu0  ;;  %v4012_v21 = vpack.c.bf16 %v4802_v13, %v4795_v56 }
 0x138   : > { %v3106_v58 = vadd.f32 %v3105_v51, %v2979_v46  ;;  %4106 = vst [vmem:[%s4660_s30 + $0xb8] sm:$0xff] %v3882_v48   ;;  %v3877_v59 = vpack.c.bf16 %v1442_v52, %v1439_v33  ;;  %v2845_v62 = vadd.f32 %v2844_v45, %v1442_v52  ;;  %v2980_v63 = vmul.f32 %v1442_v52, %v1442_v52  ;;  %v4806_v28 = vpop.f32.mrf.mxu1 }
 0x139   : > { %v4267_v0 = vpop.f32.mrf.mxu0  ;;  %4132 = vst [vmem:[%s4660_s30 + $0x188] sm:$0xff] %v4012_v21   ;;  %v4007_v38 = vpack.c.bf16 %v4806_v28, %v4799_v4 }
 0x13a   : > { %4105 = vst [vmem:[%s4660_s30 + $0xb0] sm:$0xff] %v3877_v59   ;;  %v2846_v8 = vadd.f32 %v4263_v23, %v2845_v62  ;;  %v3107_v9 = vadd.f32 %v3106_v58, %v2980_v63  ;;  %v4811_v39 = vpop.f32.mrf.mxu1  ;;  %v2985_v54 = vmul.f32 %v4267_v0, %v4267_v0 }
 0x13b   : > { %v1455_v10 = vpop.f32.mrf.mxu0  ;;  %4131 = vst [vmem:[%s4660_s30 + $0x180] sm:$0xff] %v4007_v38  }
 0x13c   : > { %v3108_v17 = vadd.f32 %v3107_v9, %v2981_v5  ;;  %v2847_v20 = vadd.f32 %v4264_v43, %v2846_v8  ;;  %v2983_v33 = vmul.f32 %v1455_v10, %v1455_v10  ;;  %v4815_v52 = vpop.f32.mrf.mxu1 }
 0x13d   : > { %v4268_v27 = vpop.f32.mrf.mxu0 }
 0x13e   : > { %v2848_v29 = vadd.f32 %v2847_v20, %v1455_v10  ;;  %v3109_v35 = vadd.f32 %v3108_v17, %v2982_v16  ;;  %v3892_v23 = vpack.c.bf16 %v4268_v27, %v4267_v0  ;;  %v4818_v63 = vpop.f32.mrf.mxu1  ;;  %v2986_v5 = vmul.f32 %v4268_v27, %v4268_v27 }
 0x13f   : > { %v1458_v37 = vpop.f32.mrf.mxu0 }
 0x140   : > { %v3110_v43 = vadd.f32 %v3109_v35, %v2983_v33  ;;  %4108 = vst [vmem:[%s4660_s30 + $0xc8] sm:$0xff] %v3892_v23   ;;  %v3887_v45 = vpack.c.bf16 %v1458_v37, %v1455_v10  ;;  %v2849_v46 = vadd.f32 %v2848_v29, %v1458_v37  ;;  %v2984_v51 = vmul.f32 %v1458_v37, %v1458_v37  ;;  %v4822_v17 = vpop.f32.mrf.mxu1 }
 0x141   : > { %v4271_v48 = vpop.f32.mrf.mxu0  ;;  %v4022_v10 = vpack.c.bf16 %v4818_v63, %v4811_v39  ;;  %v4017_v35 = vpack.c.bf16 %v4822_v17, %v4815_v52 }
 0x142   : > { %4107 = vst [vmem:[%s4660_s30 + $0xc0] sm:$0xff] %v3887_v45   ;;  %v2850_v58 = vadd.f32 %v4267_v0, %v2849_v46  ;;  %v3111_v59 = vadd.f32 %v3110_v43, %v2984_v51  ;;  %v4827_v23 = vpop.f32.mrf.mxu1  ;;  %v2989_v51 = vmul.f32 %v4271_v48, %v4271_v48 }
 0x143   : > { %v1471_v62 = vpop.f32.mrf.mxu0  ;;  %4134 = vst [vmem:[%s4660_s30 + $0x198] sm:$0xff] %v4022_v10   ;;  %5144 = vst [vmem:[#allocation3_spill] sm:$0xff] %v4827_v23 }
 0x144   : > { %v3112_v8 = vadd.f32 %v3111_v59, %v2985_v54  ;;  %v2851_v9 = vadd.f32 %v4268_v27, %v2850_v58  ;;  %v2987_v21 = vmul.f32 %v1471_v62, %v1471_v62  ;;  %4133 = vst [vmem:[%s4660_s30 + $0x190] sm:$0xff] %v4017_v35   ;;  %v4831_v46 = vpop.f32.mrf.mxu1 }
 0x145   : > { %v4272_v16 = vpop.f32.mrf.mxu0 }
 0x146   : > { %v2852_v20 = vadd.f32 %v2851_v9, %v1471_v62  ;;  %v3113_v29 = vadd.f32 %v3112_v8, %v2986_v5  ;;  %v3902_v0 = vpack.c.bf16 %v4272_v16, %v4271_v48  ;;  %v4834_v5 = vpop.f32.mrf.mxu1  ;;  %v2990_v8 = vmul.f32 %v4272_v16, %v4272_v16 }
 0x147   : > { %v1474_v33 = vpop.f32.mrf.mxu0  ;;  %5145 = vst [vmem:[#allocation4_spill] sm:$0xff] %v4834_v5 }
 0x148   : > { %v3114_v27 = vadd.f32 %v3113_v29, %v2987_v21  ;;  %4110 = vst [vmem:[%s4660_s30 + $0xd8] sm:$0xff] %v3902_v0   ;;  %v3897_v37 = vpack.c.bf16 %v1474_v33, %v1471_v62  ;;  %v2853_v38 = vadd.f32 %v2852_v20, %v1474_v33  ;;  %v2988_v43 = vmul.f32 %v1474_v33, %v1474_v33  ;;  %v4838_v21 = vpop.f32.mrf.mxu1 }
 0x149   : > { %v4275_v45 = vpop.f32.mrf.mxu0  ;;  %v4032_v62 = vpack.c.bf16 %v4834_v5, %v4827_v23  ;;  %5146 = vst [vmem:[#allocation5_spill] sm:$0xff] %v4838_v21 }
 0x14a   : > { %4109 = vst [vmem:[%s4660_s30 + $0xd0] sm:$0xff] %v3897_v37   ;;  %v2854_v54 = vadd.f32 %v4271_v48, %v2853_v38  ;;  %v3115_v58 = vadd.f32 %v3114_v27, %v2988_v43  ;;  %v4027_v27 = vpack.c.bf16 %v4838_v21, %v4831_v46  ;;  %v4843_v37 = vpop.f32.mrf.mxu1 }
 0x14b   : > { %v1487_v59 = vpop.f32.mrf.mxu0  ;;  %4136 = vst [vmem:[%s4660_s30 + $0x1a8] sm:$0xff] %v4032_v62   ;;  %5147 = vst [vmem:[#allocation6_spill] sm:$0xff] %v4843_v37 }
 0x14c   : > { %v3116_v9 = vadd.f32 %v3115_v58, %v2989_v51  ;;  %v2855_v10 = vadd.f32 %v4272_v16, %v2854_v54  ;;  %v2991_v0 = vmul.f32 %v1487_v59, %v1487_v59  ;;  %4135 = vst [vmem:[%s4660_s30 + $0x1a0] sm:$0xff] %v4027_v27   ;;  %v4847_v58 = vpop.f32.mrf.mxu1 }
 0x14d   : > { %v4276_v20 = vpop.f32.mrf.mxu0 }
 0x14e   : > { %v2856_v29 = vadd.f32 %v2855_v10, %v1487_v59  ;;  %v3117_v33 = vadd.f32 %v3116_v9, %v2990_v8  ;;  %v3912_v48 = vpack.c.bf16 %v4276_v20, %v4275_v45  ;;  %v2993_v10 = vmul.f32 %v4275_v45, %v4275_v45  ;;  %v4850_v5 = vpop.f32.mrf.mxu1 }
 0x14f   : > { %v1490_v35 = vpop.f32.mrf.mxu0  ;;  %5148 = vst [vmem:[#allocation7_spill] sm:$0xff] %v4850_v5  ;;  %v2994_v23 = vmul.f32 %v4276_v20, %v4276_v20 }
 0x150   : > { %v3118_v16 = vadd.f32 %v3117_v33, %v2991_v0  ;;  %4112 = vst [vmem:[%s4660_s30 + $0xe8] sm:$0xff] %v3912_v48   ;;  %v3907_v38 = vpack.c.bf16 %v1490_v35, %v1487_v59  ;;  %v2857_v43 = vadd.f32 %v2856_v29, %v1490_v35  ;;  %v2992_v51 = vmul.f32 %v1490_v35, %v1490_v35  ;;  %v4854_v33 = vpop.f32.mrf.mxu1 }
 0x151   : > { %v4279_v54 = vpop.f32.mrf.mxu0  ;;  %v4042_v59 = vpack.c.bf16 %v4850_v5, %v4843_v37  ;;  %5149 = vst [vmem:[#allocation8_spill] sm:$0xff] %v4854_v33 }
 0x152   : > { %4111 = vst [vmem:[%s4660_s30 + $0xe0] sm:$0xff] %v3907_v38   ;;  %v2858_v8 = vadd.f32 %v4275_v45, %v2857_v43  ;;  %v3119_v9 = vadd.f32 %v3118_v16, %v2992_v51  ;;  %v4037_v38 = vpack.c.bf16 %v4854_v33, %v4847_v58  ;;  %v4859_v43 = vpop.f32.mrf.mxu1 }
 0x153   : > { %v1503_v62 = vpop.f32.mrf.mxu0  ;;  %4138 = vst [vmem:[%s4660_s30 + $0x1b8] sm:$0xff] %v4042_v59  }
 0x154   : > { %v3120_v21 = vadd.f32 %v3119_v9, %v2993_v10  ;;  %v2859_v0 = vadd.f32 %v4276_v20, %v2858_v8  ;;  %v2995_v35 = vmul.f32 %v1503_v62, %v1503_v62  ;;  %4137 = vst [vmem:[%s4660_s30 + $0x1b0] sm:$0xff] %v4037_v38   ;;  %v4863_v9 = vpop.f32.mrf.mxu1 }
 0x155   : > { %v4280_v29 = vpop.f32.mrf.mxu0 }
 0x156   : > { %v2860_v48 = vadd.f32 %v2859_v0, %v1503_v62  ;;  %v3121_v27 = vadd.f32 %v3120_v21, %v2994_v23  ;;  %v3922_v45 = vpack.c.bf16 %v4280_v29, %v4279_v54  ;;  %v2997_v0 = vmul.f32 %v4279_v54, %v4279_v54  ;;  %v4866_v59 = vpop.f32.mrf.mxu1 }
 0x157   : > { %v1506_v16 = vpop.f32.mrf.mxu0  ;;  %v2998_v5 = vmul.f32 %v4280_v29, %v4280_v29 }
 0x158   : > { %v3122_v20 = vadd.f32 %v3121_v27, %v2995_v35  ;;  %4114 = vst [vmem:[%s4660_s30 + $0xf8] sm:$0xff] %v3922_v45   ;;  %v3917_v51 = vpack.c.bf16 %v1506_v16, %v1503_v62  ;;  %v2861_v10 = vadd.f32 %v2860_v48, %v1506_v16  ;;  %v2996_v8 = vmul.f32 %v1506_v16, %v1506_v16  ;;  %v4870_v62 = vpop.f32.mrf.mxu1 }
 0x159   : > { %v4052_v35 = vpack.c.bf16 %v4866_v59, %v4859_v43  ;;  %v2999_v48 = vmul.f32 %v4671_v7, %v4671_v7 }
 0x15a   : > { %4113 = vst [vmem:[%s4660_s30 + $0xf0] sm:$0xff] %v3917_v51   ;;  %v2862_v23 = vadd.f32 %v4279_v54, %v2861_v10  ;;  %v3123_v21 = vadd.f32 %v3122_v20, %v2996_v8  ;;  %v4047_v54 = vpack.c.bf16 %v4870_v62, %v4863_v9  ;;  %v4878_v16 = vpop.f32.mrf.mxu1  ;;  %v3000_v20 = vmul.f32 %v4678_v18, %v4678_v18 }
 0x15b   : > { %4140 = vst [vmem:[%s4660_s30 + $0x1c8] sm:$0xff] %v4052_v35   ;;  %v3002_v10 = vmul.f32 %v4674_v12, %v4674_v12 }
 0x15c   : > { %v2863_v37 = vadd.f32 %v4280_v29, %v2862_v23  ;;  %v3124_v33 = vadd.f32 %v3123_v21, %v2997_v0  ;;  %4139 = vst [vmem:[%s4660_s30 + $0x1c0] sm:$0xff] %v4047_v54   ;;  %v4884_v51 = vpop.f32.mrf.mxu1  ;;  %v3004_v54 = vmul.f32 %v4694_v42, %v4694_v42 }
 0x15e   : > { %v2864_v27 = vadd.f32 %v2863_v37, %v4671_v7  ;;  %v3125_v45 = vadd.f32 %v3124_v33, %v2998_v5  ;;  %v3001_v7 = vmul.f32 %v4668_v1, %v4668_v1  ;;  %v4889_v33 = vpop.f32.mrf.mxu1 }
 0x160   : > { %v3126_v38 = vadd.f32 %v3125_v45, %v2999_v48  ;;  %v2865_v29 = vadd.f32 %v2864_v27, %v4678_v18  ;;  %v4062_v18 = vpack.c.bf16 %v4889_v33, %v4878_v16  ;;  %v4896_v23 = vpop.f32.mrf.mxu1 }
 0x161   : > { %v4057_v48 = vpack.c.bf16 %v4896_v23, %v4884_v51 }
 0x162   : > { %v2866_v5 = vadd.f32 %v4668_v1, %v2865_v29  ;;  %v3127_v37 = vadd.f32 %v3126_v38, %v3000_v20  ;;  %v3003_v1 = vmul.f32 %v4687_v31, %v4687_v31  ;;  %4142 = vst [vmem:[%s4660_s30 + $0x1d8] sm:$0xff] %v4062_v18   ;;  %v4904_v27 = vpop.f32.mrf.mxu1 }
 0x163   : > { %4141 = vst [vmem:[%s4660_s30 + $0x1d0] sm:$0xff] %v4057_v48   ;;  %v3008_v48 = vmul.f32 %v4710_v3, %v4710_v3 }
 0x164   : > { %v3128_v8 = vadd.f32 %v3127_v37, %v3001_v7  ;;  %v2867_v0 = vadd.f32 %v4674_v12, %v2866_v5  ;;  %v4910_v38 = vpop.f32.mrf.mxu1  ;;  %v3006_v5 = vmul.f32 %v4690_v36, %v4690_v36 }
 0x166   : > { %v2868_v21 = vadd.f32 %v2867_v0, %v4687_v31  ;;  %v3129_v35 = vadd.f32 %v3128_v8, %v3002_v10  ;;  %v3005_v31 = vmul.f32 %v4683_v25, %v4683_v25  ;;  %v4915_v7 = vpop.f32.mrf.mxu1 }
 0x168   : > { %v3130_v45 = vadd.f32 %v3129_v35, %v3003_v1  ;;  %v2869_v12 = vadd.f32 %v2868_v21, %v4694_v42  ;;  %v4072_v42 = vpack.c.bf16 %v4915_v7, %v4904_v27  ;;  %v4922_v8 = vpop.f32.mrf.mxu1 }
 0x169   : > { %v4067_v21 = vpack.c.bf16 %v4922_v8, %v4910_v38 }
 0x16a   : > { %v2870_v29 = vadd.f32 %v4683_v25, %v2869_v12  ;;  %v3131_v20 = vadd.f32 %v3130_v45, %v3004_v54  ;;  %v3007_v25 = vmul.f32 %v4703_v55, %v4703_v55  ;;  %4144 = vst [vmem:[%s4660_s30 + $0x1e8] sm:$0xff] %v4072_v42   ;;  %v4930_v1 = vpop.f32.mrf.mxu1 }
 0x16b   : > { %4143 = vst [vmem:[%s4660_s30 + $0x1e0] sm:$0xff] %v4067_v21   ;;  %v3013_v21 = vmul.f32 %v4715_v11, %v4715_v11 }
 0x16c   : > { %v3132_v37 = vadd.f32 %v3131_v20, %v3005_v31  ;;  %v2871_v10 = vadd.f32 %v4690_v36, %v2870_v29  ;;  %v4936_v45 = vpop.f32.mrf.mxu1  ;;  %v3010_v29 = vmul.f32 %v4706_v60, %v4706_v60 }
 0x16e   : > { %v2872_v0 = vadd.f32 %v2871_v10, %v4703_v55  ;;  %v3133_v18 = vadd.f32 %v3132_v37, %v3006_v5  ;;  %v3009_v55 = vmul.f32 %v4699_v49, %v4699_v49  ;;  %v4941_v31 = vpop.f32.mrf.mxu1 }
 0x170   : > { %v3134_v35 = vadd.f32 %v3133_v18, %v3007_v25  ;;  %v2873_v36 = vadd.f32 %v2872_v0, %v4710_v3  ;;  %v4082_v3 = vpack.c.bf16 %v4941_v31, %v4930_v1  ;;  %v4948_v37 = vpop.f32.mrf.mxu1 }
 0x171   : > { %v4077_v0 = vpack.c.bf16 %v4948_v37, %v4936_v45 }
 0x172   : > { %v2874_v12 = vadd.f32 %v4699_v49, %v2873_v36  ;;  %v3135_v54 = vadd.f32 %v3134_v35, %v3008_v48  ;;  %v3011_v49 = vmul.f32 %v4719_v19, %v4719_v19  ;;  %4146 = vst [vmem:[%s4660_s30 + $0x1f8] sm:$0xff] %v4082_v3  }
 0x173   : > { %4145 = vst [vmem:[%s4660_s30 + $0x1f0] sm:$0xff] %v4077_v0   ;;  %v3019_v0 = vmul.f32 %v4751_v15, %v4751_v15 }
 0x174   : > { %v3136_v20 = vadd.f32 %v3135_v54, %v3009_v55  ;;  %v2875_v5 = vadd.f32 %v4706_v60, %v2874_v12  ;;  %v3012_v60 = vmul.f32 %v4726_v32, %v4726_v32  ;;  %v3015_v54 = vmul.f32 %v4735_v47, %v4735_v47 }
 0x176   : > { %v2876_v10 = vadd.f32 %v2875_v5, %v4719_v19  ;;  %v3137_v42 = vadd.f32 %v3136_v20, %v3010_v29  ;;  %v3014_v19 = vmul.f32 %v4722_v24, %v4722_v24  ;;  %v3016_v5 = vmul.f32 %v4742_v61, %v4742_v61 }
 0x178   : > { %v3138_v25 = vadd.f32 %v3137_v42, %v3011_v49  ;;  %v2877_v18 = vadd.f32 %v2876_v10, %v4726_v32 }
 0x17a   : > { %v2878_v35 = vadd.f32 %v4715_v11, %v2877_v18  ;;  %v3139_v36 = vadd.f32 %v3138_v25, %v3012_v60  ;;  %v3017_v11 = vmul.f32 %v4731_v40, %v4731_v40  ;;  %v3020_v60 = vmul.f32 %v4758_v30, %v4758_v30 }
 0x17c   : > { %v3140_v48 = vadd.f32 %v3139_v36, %v3013_v21  ;;  %v2879_v55 = vadd.f32 %v4722_v24, %v2878_v35  ;;  %v3018_v24 = vmul.f32 %v4738_v53, %v4738_v53 }
 0x17e   : > { %v2880_v12 = vadd.f32 %v2879_v55, %v4735_v47  ;;  %v3141_v29 = vadd.f32 %v3140_v48, %v3014_v19  ;;  %v3023_v48 = vmul.f32 %v4767_v50, %v4767_v50 }
 0x180   : > { %v3142_v32 = vadd.f32 %v3141_v29, %v3015_v54  ;;  %v2881_v20 = vadd.f32 %v2880_v12, %v4742_v61  ;;  %v3024_v54 = vmul.f32 %v4774_v2, %v4774_v2 }
 0x182   : > { %v2882_v3 = vadd.f32 %v4731_v40, %v2881_v20  ;;  %v3143_v10 = vadd.f32 %v3142_v32, %v3016_v5  ;;  %v3021_v40 = vmul.f32 %v4747_v6, %v4747_v6 }
 0x184   : > { %v3144_v49 = vadd.f32 %v3143_v10, %v3017_v11  ;;  %v2883_v42 = vadd.f32 %v4738_v53, %v2882_v3  ;;  %v3022_v53 = vmul.f32 %v4754_v22, %v4754_v22  ;;  %v3027_v11 = vmul.f32 %v4783_v26, %v4783_v26 }
 0x186   : > { %v2884_v47 = vadd.f32 %v2883_v42, %v4751_v15  ;;  %v3145_v25 = vadd.f32 %v3144_v49, %v3018_v24  ;;  %v3028_v24 = vmul.f32 %v4790_v44, %v4790_v44 }
 0x188   : > { %v3146_v18 = vadd.f32 %v3145_v25, %v3019_v0  ;;  %v2885_v61 = vadd.f32 %v2884_v47, %v4758_v30  ;;  %v3031_v25 = vmul.f32 %v4799_v4, %v4799_v4 }
 0x18a   : > { %v2886_v21 = vadd.f32 %v4747_v6, %v2885_v61  ;;  %v3147_v35 = vadd.f32 %v3146_v18, %v3020_v60  ;;  %v3025_v6 = vmul.f32 %v4763_v41, %v4763_v41  ;;  %v3032_v60 = vmul.f32 %v4806_v28, %v4806_v28 }
 0x18c   : > { %v3148_v36 = vadd.f32 %v3147_v35, %v3021_v40  ;;  %v2887_v19 = vadd.f32 %v4754_v22, %v2886_v21  ;;  %v3026_v22 = vmul.f32 %v4770_v57, %v4770_v57 }
 0x18e   : > { %v2888_v15 = vadd.f32 %v2887_v19, %v4767_v50  ;;  %v3149_v55 = vadd.f32 %v3148_v36, %v3022_v53  ;;  %v3035_v36 = vmul.f32 %v4815_v52, %v4815_v52 }
 0x190   : > { %v3150_v12 = vadd.f32 %v3149_v55, %v3023_v48  ;;  %v2889_v30 = vadd.f32 %v2888_v15, %v4774_v2  ;;  %v3036_v48 = vmul.f32 %v4822_v17, %v4822_v17 }
 0x192   : > { %v2890_v29 = vadd.f32 %v4763_v41, %v2889_v30  ;;  %v3151_v32 = vadd.f32 %v3150_v12, %v3024_v54  ;;  %v3029_v41 = vmul.f32 %v4779_v14, %v4779_v14 }
 0x194   : > { %v3152_v20 = vadd.f32 %v3151_v32, %v3025_v6  ;;  %v2891_v5 = vadd.f32 %v4770_v57, %v2890_v29  ;;  %v3030_v57 = vmul.f32 %v4786_v34, %v4786_v34  ;;  %v3039_v6 = vmul.f32 %v4831_v46, %v4831_v46 }
 0x196   : > { %v2892_v50 = vadd.f32 %v2891_v5, %v4783_v26  ;;  %v3153_v3 = vadd.f32 %v3152_v20, %v3026_v22 }
 0x198   : > { %v3154_v10 = vadd.f32 %v3153_v3, %v3027_v11  ;;  %v2893_v2 = vadd.f32 %v2892_v50, %v4790_v44  ;;  %v5152_v3 = vld [vmem:[#allocation4_spill] sm:$0xff] }
 0x19a   : > { %v2894_v49 = vadd.f32 %v4779_v14, %v2893_v2  ;;  %v3155_v42 = vadd.f32 %v3154_v10, %v3028_v24  ;;  %v3033_v14 = vmul.f32 %v4795_v56, %v4795_v56  ;;  %v3043_v24 = vmul.f32 %v4847_v58, %v4847_v58 }
 0x19c   : > { %v3156_v47 = vadd.f32 %v3155_v42, %v3029_v41  ;;  %v2895_v0 = vadd.f32 %v4786_v34, %v2894_v49  ;;  %v3034_v34 = vmul.f32 %v4802_v13, %v4802_v13  ;;  %v5153_v42 = vld [vmem:[#allocation8_spill] sm:$0xff] }
 0x19e   : > { %v2896_v26 = vadd.f32 %v2895_v0, %v4799_v4  ;;  %v3157_v18 = vadd.f32 %v3156_v47, %v3030_v57  ;;  %v3044_v47 = vmul.f32 %v5153_v42, %v5153_v42  ;;  %v5154_v0 = vld [vmem:[#allocation6_spill] sm:$0xff] }
 0x1a0   : > { %v3158_v61 = vadd.f32 %v3157_v18, %v3031_v25  ;;  %v2897_v44 = vadd.f32 %v2896_v26, %v4806_v28  ;;  %v3045_v26 = vmul.f32 %v5154_v0, %v5154_v0 }
 0x1a2   : > { %v2898_v40 = vadd.f32 %v4795_v56, %v2897_v44  ;;  %v3159_v21 = vadd.f32 %v3158_v61, %v3032_v60  ;;  %v3037_v56 = vmul.f32 %v4811_v39, %v4811_v39  ;;  %v5155_v61 = vld [vmem:[#allocation7_spill] sm:$0xff] }
 0x1a3   : > { %v3046_v44 = vmul.f32 %v5155_v61, %v5155_v61 }
 0x1a4   : > { %v3160_v35 = vadd.f32 %v3159_v21, %v3033_v14  ;;  %v2899_v53 = vadd.f32 %v4802_v13, %v2898_v40  ;;  %v3038_v13 = vmul.f32 %v4818_v63, %v4818_v63  ;;  %v3047_v40 = vmul.f32 %v4863_v9, %v4863_v9 }
 0x1a6   : > { %v2900_v4 = vadd.f32 %v2899_v53, %v4815_v52  ;;  %v3161_v19 = vadd.f32 %v3160_v35, %v3034_v34  ;;  %v3048_v53 = vmul.f32 %v4870_v62, %v4870_v62 }
 0x1a8   : > { %v3162_v15 = vadd.f32 %v3161_v19, %v3035_v36  ;;  %v2901_v28 = vadd.f32 %v2900_v4, %v4822_v17  ;;  %v5150_v17 = vld [vmem:[#allocation5_spill] sm:$0xff]  ;;  %v3049_v4 = vmul.f32 %v4859_v43, %v4859_v43 }
 0x1a9   : > { %v3040_v20 = vmul.f32 %v5150_v17, %v5150_v17 }
 0x1aa   : > { %v2902_v55 = vadd.f32 %v4811_v39, %v2901_v28  ;;  %v3163_v12 = vadd.f32 %v3162_v15, %v3036_v48  ;;  %v5151_v39 = vld [vmem:[#allocation3_spill] sm:$0xff]  ;;  %v3050_v15 = vmul.f32 %v4866_v59, %v4866_v59 }
 0x1ab   : > { %v3041_v5 = vmul.f32 %v5151_v39, %v5151_v39 }
 0x1ac   : > { %v3164_v30 = vadd.f32 %v3163_v12, %v3037_v56  ;;  %v2903_v54 = vadd.f32 %v4818_v63, %v2902_v55  ;;  %v3042_v63 = vmul.f32 %v5152_v3, %v5152_v3  ;;  %v3051_v56 = vmul.f32 %v4884_v51, %v4884_v51 }
 0x1ae   : > { %v2904_v52 = vadd.f32 %v2903_v54, %v4831_v46  ;;  %v3165_v29 = vadd.f32 %v3164_v30, %v3038_v13  ;;  %v3052_v13 = vmul.f32 %v4896_v23, %v4896_v23 }
 0x1b0   : > { %v3166_v32 = vadd.f32 %v3165_v29, %v3039_v6  ;;  %v2905_v22 = vadd.f32 %v2904_v52, %v5150_v17  ;;  %v3055_v29 = vmul.f32 %v4910_v38, %v4910_v38 }
 0x1b2   : > { %v2906_v50 = vadd.f32 %v5151_v39, %v2905_v22  ;;  %v3167_v11 = vadd.f32 %v3166_v32, %v3040_v20  ;;  %v3056_v22 = vmul.f32 %v4922_v8, %v4922_v8 }
 0x1b4   : > { %v3168_v10 = vadd.f32 %v3167_v11, %v3041_v5  ;;  %v2907_v2 = vadd.f32 %v5152_v3, %v2906_v50  ;;  %v3059_v11 = vmul.f32 %v4936_v45, %v4936_v45 }
 0x1b6   : > { %v2908_v46 = vadd.f32 %v2907_v2, %v4847_v58  ;;  %v3169_v41 = vadd.f32 %v3168_v10, %v3042_v63  ;;  %v3061_v10 = vmul.f32 %v4930_v1, %v4930_v1 }
 0x1b8   : > { %v3170_v49 = vadd.f32 %v3169_v41, %v3043_v24  ;;  %v2909_v57 = vadd.f32 %v2908_v46, %v5153_v42 }
 0x1ba   : > { %v2910_v25 = vadd.f32 %v5154_v0, %v2909_v57  ;;  %v3171_v18 = vadd.f32 %v3170_v49, %v3044_v47 }
 0x1bc   : > { %v3172_v60 = vadd.f32 %v3171_v18, %v3045_v26  ;;  %v2911_v14 = vadd.f32 %v5155_v61, %v2910_v25 }
 0x1be   : > { %v2912_v58 = vadd.f32 %v2911_v14, %v4863_v9  ;;  %v3173_v21 = vadd.f32 %v3172_v60, %v3046_v44 }
 0x1c0   : > { %v3174_v34 = vadd.f32 %v3173_v21, %v3047_v40  ;;  %v2913_v35 = vadd.f32 %v2912_v58, %v4870_v62 }
 0x1c2   : > { %v2914_v36 = vadd.f32 %v4859_v43, %v2913_v35  ;;  %v3175_v19 = vadd.f32 %v3174_v34, %v3048_v53  ;;  %v3053_v43 = vmul.f32 %v4878_v16, %v4878_v16 }
 0x1c4   : > { %v3176_v28 = vadd.f32 %v3175_v19, %v3049_v4  ;;  %v2915_v48 = vadd.f32 %v4866_v59, %v2914_v36  ;;  %v3054_v59 = vmul.f32 %v4889_v33, %v4889_v33 }
 0x1c6   : > { %v2916_v9 = vadd.f32 %v2915_v48, %v4884_v51  ;;  %v3177_v55 = vadd.f32 %v3176_v28, %v3050_v15 }
 0x1c8   : > { %v3178_v12 = vadd.f32 %v3177_v55, %v3051_v56  ;;  %v2917_v62 = vadd.f32 %v2916_v9, %v4896_v23 }
 0x1ca   : > { %v2918_v30 = vadd.f32 %v4878_v16, %v2917_v62  ;;  %v3179_v54 = vadd.f32 %v3178_v12, %v3052_v13  ;;  %v3057_v16 = vmul.f32 %v4904_v27, %v4904_v27 }
 0x1cc   : > { %v3180_v52 = vadd.f32 %v3179_v54, %v3053_v43  ;;  %v2919_v6 = vadd.f32 %v4889_v33, %v2918_v30  ;;  %v3058_v33 = vmul.f32 %v4915_v7, %v4915_v7 }
 0x1ce   : > { %v2920_v51 = vadd.f32 %v2919_v6, %v4910_v38  ;;  %v3181_v32 = vadd.f32 %v3180_v52, %v3054_v59 }
 0x1d0   : > { %v3182_v17 = vadd.f32 %v3181_v32, %v3055_v29  ;;  %v2921_v23 = vadd.f32 %v2920_v51, %v4922_v8 }
 0x1d2   : > { %v2922_v20 = vadd.f32 %v4904_v27, %v2921_v23  ;;  %v3183_v39 = vadd.f32 %v3182_v17, %v3056_v22  ;;  %v3060_v27 = vmul.f32 %v4948_v37, %v4948_v37 }
 0x1d4   : > { %v3184_v5 = vadd.f32 %v3183_v39, %v3057_v16  ;;  %v2923_v38 = vadd.f32 %v4915_v7, %v2922_v20  ;;  %v3062_v7 = vmul.f32 %v4941_v31, %v4941_v31 }
 0x1d6   : > { %v2924_v50 = vadd.f32 %v2923_v38, %v4936_v45  ;;  %v3185_v3 = vadd.f32 %v3184_v5, %v3058_v33 }
 0x1d8   : > { %v3186_v8 = vadd.f32 %v3185_v3, %v3059_v11  ;;  %v2925_v63 = vadd.f32 %v2924_v50, %v4948_v37 }
 0x1da   : > { %v2926_v2 = vadd.f32 %v4930_v1, %v2925_v63  ;;  %v3187_v46 = vadd.f32 %v3186_v8, %v3060_v27 }
 0x1dc   : > { %v2927_v24 = vadd.f32 %v4941_v31, %v2926_v2  ;;  %v3188_v45 = vadd.f32 %v3187_v46, %v3061_v10 }
 0x1de   : > { %v2928_v41 = vrot.slane %v2927_v24, 4  ;;  %v3189_v49 = vadd.f32 %v3188_v45, %v3062_v7 }
 0x1e0   : > { %v2929_v42 = vadd.f32 %v2928_v41, %v2927_v24  ;;  %v3190_v57 = vrot.slane %v3189_v49, 4 }
 0x1e2   : > { %v2930_v47 = vrot.slane %v2929_v42, 2  ;;  %v3191_v0 = vadd.f32 %v3190_v57, %v3189_v49 }
 0x1e4   : > { %v2931_v37 = vadd.f32 %v2930_v47, %v2929_v42  ;;  %v3192_v26 = vrot.slane %v3191_v0, 2 }
 0x1e6   : > { %v2932_v25 = vrot.slane %v2931_v37, 1  ;;  %v3193_v18 = vadd.f32 %v3192_v26, %v3191_v0 }
 0x1e8   : > { %v2933_v1 = vadd.f32 %v2932_v25, %v2931_v37  ;;  %v3194_v61 = vrot.slane %v3193_v18, 1 }
 0x1ea   : > { %2934 = vst [vmem:[%s298_s7] sm:$0x1] %v2933_v1  ;;  %v3195_v31 = vadd.f32 %v3194_v61, %v3193_v18 }
 0x1ec   : > { %3196 = vst [vmem:[%s304_s10] sm:$0x1] %v3195_v31 }
 0x1ed PF: > { %s15_s17 = sadd.s32 1, %s4462_s17   ;;  %s5156_s15 = smov %s4458_s16 }
 0x1ee   : > { %p12_p6 = scmp.ge.s32.totalorder %s15_s17, 46   ;;  %s5157_s16 = smov %s5159_s18 }
 0x1f0   :  { %14 = sbr.rel (!%p12_p6) target bundleno = 2 (0x2), region = 93 }

</bundles_post_ra>
